<compile_context>
chip_gen: v5e
topology: v5e:2x2
jax: 0.10.0
libtpu: 0.0.40
codegen_flags: <defaults>
</compile_context>

<pallas_src>
import functools

import jax
import jax.numpy as jnp
from jax.experimental import pallas as pl
from jax.experimental.pallas import tpu as pltpu

_VMEM_LIMIT = 32 * 1024 * 1024


def _cdiv(a, b):
    return -(-a // b)


def _round_up(v, m):
    return (v + m - 1) // m * m


# ---------------------------------------------------------------------------
# Single fused kernel per row tile:
#   H_tile   = relu( X_tile @ W_lin + bias + sum_t A_t[tile, :] @ (X @ W_t) )
#   stats    = [sum(H_masked), sum(H_masked^2)]  (per-tile BatchNorm partials)
# No program_id, no pl.when, no scratch: every grid step is independent.
# ---------------------------------------------------------------------------
def _graphconv_kernel(a_ref, xall_ref, xtile_ref, wconv_ref, wlin_ref, bias_ref,
                      mask_ref, h_ref, stats_ref, *, n_et):
    # Linear branch + hoisted bias (b_lin + sum_t b_conv_t), f32 accumulation.
    acc = jnp.dot(xtile_ref[...], wlin_ref[...],
                  preferred_element_type=jnp.float32) + bias_ref[...]

    xall = xall_ref[...]                              # [n_pad, din] bf16, resident
    for t in range(n_et):                             # small static loop over types
        # On-the-fly feature transform for ALL nodes (XW never touches HBM).
        xw_t = jnp.dot(xall, wconv_ref[t],
                       preferred_element_type=jnp.float32).astype(jnp.bfloat16)
        # Aggregation: normalized dense adjacency (bf16) times transformed feats.
        acc = acc + jnp.dot(a_ref[t], xw_t, preferred_element_type=jnp.float32)

    h = jnp.maximum(acc, 0.0)                         # f32 activations
    h_ref[...] = h.astype(h_ref.dtype)                # bf16 writeback

    # BatchNorm partial stats in f32; mask rows that are pure padding.
    hm = h * mask_ref[...]
    s = jnp.sum(hm, axis=0, keepdims=True)            # [1, dout]
    ss = jnp.sum(hm * hm, axis=0, keepdims=True)      # [1, dout]
    stats_ref[...] = jnp.concatenate([s, ss], axis=0)[None]   # [1, 2, dout]


def _dense_normalized_adj(edge_index, edge_attr, edge_type, num_nodes):
    """Glue: D^{-1/2}(A_et + I)D^{-1/2}, PyG GCNConv convention (A[dst, src])."""
    src = edge_index[0]
    dst = edge_index[1]
    w = (edge_attr == edge_type).astype(jnp.float32)
    a = jnp.zeros((num_nodes, num_nodes), jnp.float32).at[dst, src].add(w)
    a = a + jnp.eye(num_nodes, dtype=jnp.float32)              # self loops
    deg = jnp.sum(a, axis=1)
    dinv = jnp.where(deg > 0, jax.lax.rsqrt(jnp.maximum(deg, 1e-12)), 0.0)
    return dinv[:, None] * a * dinv[None, :]


def graph_conv_forward(x, edge_index, edge_attr, params, edge_types, eps=1e-5):
    n, din = x.shape
    dout = params["w_lin"].shape[1]
    n_et = len(edge_types)
    assert n_et >= 1, "this implementation covers the use_conv=True path"

    # ---- row tiling: minimize padding, guarantee >= 2 tiles (v7x dual-TC) ----
    g = max(2, _cdiv(n, 256))
    tm = _round_up(_cdiv(n, g), 16)        # multiple of 16 for bf16 sublanes
    n_pad = g * tm

    # ---- glue: pad/cast inputs, hoist biases --------------------------------
    xb = jnp.pad(x, ((0, n_pad - n), (0, 0))).astype(jnp.bfloat16)
    wconv = params["w_conv"].astype(jnp.bfloat16)          # [T, din, dout]
    wlin = params["w_lin"].astype(jnp.bfloat16)            # [din, dout]
    bias = (params["b_lin"] + jnp.sum(params["b_conv"], axis=0)
            ).astype(jnp.float32)                          # [1, dout]
    mask = (jnp.arange(n_pad) < n).astype(jnp.float32)[:, None]   # [n_pad, 1]

    # Per-edge-type normalized adjacency, written straight into a padded bf16
    # [T, n_pad, n_pad] buffer (no f32 concat materialization).
    # TODO(synk): for large N replace this dense O(T*N^2) build with a
    # blocked-sparse / CSR gather path (scalar-prefetch offsets + manual DMA).
    a_all = jnp.zeros((n_et, n_pad, n_pad), jnp.bfloat16)
    for i, et in enumerate(edge_types):
        a_t = _dense_normalized_adj(edge_index, edge_attr, et, n)
        a_all = a_all.at[i, :n, :n].set(a_t.astype(jnp.bfloat16))

    # ---- one fused pallas_call: transform + aggregate + relu + BN partials --
    h, stats = pl.pallas_call(
        functools.partial(_graphconv_kernel, n_et=n_et),
        out_shape=(jax.ShapeDtypeStruct((n_pad, dout), jnp.bfloat16),
                   jax.ShapeDtypeStruct((g, 2, dout), jnp.float32)),
        grid=(g,),
        in_specs=[
            pl.BlockSpec((n_et, tm, n_pad), lambda i: (0, i, 0)),   # A row tiles
            pl.BlockSpec((n_pad, din), lambda i: (0, 0)),           # X (all rows)
            pl.BlockSpec((tm, din), lambda i: (i, 0)),              # X (tile rows)
            pl.BlockSpec((n_et, din, dout), lambda i: (0, 0, 0)),   # W_conv
            pl.BlockSpec((din, dout), lambda i: (0, 0)),            # W_lin
            pl.BlockSpec((1, dout), lambda i: (0, 0)),              # hoisted bias
            pl.BlockSpec((tm, 1), lambda i: (i, 0)),                # row mask
        ],
        out_specs=(
            pl.BlockSpec((tm, dout), lambda i: (i, 0)),             # H (bf16)
            pl.BlockSpec((1, 2, dout), lambda i: (i, 0, 0)),        # BN partials
        ),
        compiler_params=pltpu.CompilerParams(
            dimension_semantics=("parallel",),
            vmem_limit_bytes=_VMEM_LIMIT),
    )(a_all, xb, xb, wconv, wlin, bias, mask)

    # ---- combine per-tile stats + apply BatchNorm as fused XLA elementwise ---
    # (training-mode batch stats, biased variance; no extra Pallas pass over H)
    inv_n = 1.0 / float(n)
    mean = jnp.sum(stats[:, 0, :], axis=0, keepdims=True) * inv_n       # [1, dout]
    ex2 = jnp.sum(stats[:, 1, :], axis=0, keepdims=True) * inv_n
    var = jnp.maximum(ex2 - mean * mean, 0.0)
    scale = params["gamma"].astype(jnp.float32) * jax.lax.rsqrt(var + eps)
    shift = params["beta"].astype(jnp.float32) - mean * scale
    return h[:n].astype(jnp.float32) * scale + shift


def init_params(key, dim_input, dim_output, num_edge_types):
    k1, k2, k3 = jax.random.split(key, 3)
    scale_c = 1.0 / jnp.sqrt(dim_input)
    return {
        "w_conv": jax.random.normal(k1, (num_edge_types, dim_input, dim_output),
                                    jnp.float32) * scale_c,
        "b_conv": jax.random.normal(k2, (num_edge_types, 1, dim_output),
                                    jnp.float32) * 0.01,
        "w_lin": jax.random.normal(k3, (dim_input, dim_output),
                                   jnp.float32) * scale_c,
        "b_lin": jnp.zeros((1, dim_output), jnp.float32),
        "gamma": jnp.ones((1, dim_output), jnp.float32),
        "beta": jnp.zeros((1, dim_output), jnp.float32),
    }


def _reference(x, edge_index, edge_attr, params, edge_types, eps=1e-5):
    """Pure-JAX reference mirroring the kernel's bf16 storage of MXU operands/H."""
    def rnd(v):
        return v.astype(jnp.bfloat16).astype(jnp.float32)

    xb = rnd(x)
    acc = xb @ rnd(params["w_lin"]) + params["b_lin"] + jnp.sum(params["b_conv"], 0)
    for i, et in enumerate(edge_types):
        a_hat = rnd(_dense_normalized_adj(edge_index, edge_attr, et, x.shape[0]))
        xw = rnd(xb @ rnd(params["w_conv"][i]))
        acc = acc + a_hat @ xw
    h = jnp.maximum(acc, 0.0)
    mean = jnp.mean(h, axis=0, keepdims=True)
    var = jnp.maximum(jnp.mean(h * h, axis=0, keepdims=True) - mean * mean, 0.0)
    hb = rnd(h)                                   # mirrors bf16 H writeback
    return (hb - mean) * jax.lax.rsqrt(var + eps) * params["gamma"] + params["beta"]


if __name__ == "__main__":
    # N=300 exercises 2 row tiles (tm=160, n_pad=320), padded-row masking for
    # the two-phase BatchNorm, and all 3 per-type aggregation matmuls.
    N, DIN, DOUT, E = 300, 32, 32, 900
    EDGE_TYPES = [0, 1, 2]

    key = jax.random.PRNGKey(0)
    kx, ke, ka, kp = jax.random.split(key, 4)

    x = jax.random.normal(kx, (N, DIN), jnp.float32)
    edge_index = jax.random.randint(ke, (2, E), 0, N, dtype=jnp.int32)
    edge_attr = jax.random.randint(ka, (E,), 0, len(EDGE_TYPES), dtype=jnp.int32)
    params = init_params(kp, DIN, DOUT, len(EDGE_TYPES))

    out = graph_conv_forward(x, edge_index, edge_attr, params, EDGE_TYPES)
    jax.block_until_ready(out)
    assert out.shape == (N, DOUT) and out.dtype == jnp.float32

    ref = _reference(x, edge_index, edge_attr, params, EDGE_TYPES)
    err = float(jnp.max(jnp.abs(out - ref)))
    # bf16 operand/H quantization is mirrored in the reference; tolerance covers
    # occasional one-ulp rounding flips from f32 accumulation-order differences.
    assert jnp.allclose(out, ref, atol=2e-2, rtol=2e-2), f"max abs err {err}"
    print("KERNEL_OK")
</pallas_src>

<mosaic_0001>
module attributes {stable_mosaic.version = 11 : i64} {
  func.func @_graphconv_kernel(%arg0: i32, %arg1: memref<3x160x320xbf16, #tpu.memory_space<vmem>>, %arg2: memref<320x32xbf16, #tpu.memory_space<vmem>>, %arg3: memref<160x32xbf16, #tpu.memory_space<vmem>>, %arg4: memref<3x32x32xbf16, #tpu.memory_space<vmem>>, %arg5: memref<32x32xbf16, #tpu.memory_space<vmem>>, %arg6: memref<1x32xf32, #tpu.memory_space<vmem>>, %arg7: memref<160x1xf32, #tpu.memory_space<vmem>>, %arg8: memref<160x32xbf16, #tpu.memory_space<vmem>>, %arg9: memref<1x2x32xf32, #tpu.memory_space<vmem>>) attributes {dimension_semantics = [#tpu.dimension_semantics<parallel>], iteration_bounds = array<i64: 2>, scalar_prefetch = 0 : i64, scratch_operands = 0 : i64, tpu.core_type = #tpu.core_type<tc>, window_params = [{transform_indices = @transform_0, window_bounds = array<i64: 3, 160, 320>}, {pipeline_mode = #tpu.pipeline_mode<synchronous>, transform_indices = @transform_1, window_bounds = array<i64: 320, 32>}, {transform_indices = @transform_2, window_bounds = array<i64: 160, 32>}, {pipeline_mode = #tpu.pipeline_mode<synchronous>, transform_indices = @transform_3, window_bounds = array<i64: 3, 32, 32>}, {pipeline_mode = #tpu.pipeline_mode<synchronous>, transform_indices = @transform_4, window_bounds = array<i64: 32, 32>}, {pipeline_mode = #tpu.pipeline_mode<synchronous>, transform_indices = @transform_5, window_bounds = array<i64: 1, 32>}, {transform_indices = @transform_6, window_bounds = array<i64: 160, 1>}, {transform_indices = @transform_7, window_bounds = array<i64: 160, 32>}, {transform_indices = @transform_8, window_bounds = array<i64: 1, 2, 32>}]} {
    %c0 = arith.constant 0 : index
    %c0_0 = arith.constant 0 : index
    %0 = vector.load %arg3[%c0, %c0_0] : memref<160x32xbf16, #tpu.memory_space<vmem>>, vector<160x32xbf16>
    %c0_1 = arith.constant 0 : index
    %c0_2 = arith.constant 0 : index
    %1 = vector.load %arg5[%c0_1, %c0_2] : memref<32x32xbf16, #tpu.memory_space<vmem>>, vector<32x32xbf16>
    %cst = arith.constant dense<0.000000e+00> : vector<160x32xf32>
    %2 = tpu.matmul %0, %1, %cst {dimension_numbers = #tpu.dot_dimension_numbers<[1], [0], [0], [1], [0, 0, 1, 1], [], []>} : vector<160x32xbf16>, vector<32x32xbf16>, vector<160x32xf32> -> vector<160x32xf32>
    %c0_3 = arith.constant 0 : index
    %c0_4 = arith.constant 0 : index
    %3 = vector.load %arg6[%c0_3, %c0_4] : memref<1x32xf32, #tpu.memory_space<vmem>>, vector<1x32xf32>
    %4 = vector.broadcast %3 : vector<1x32xf32> to vector<160x32xf32>
    %5 = arith.addf %2, %4 : vector<160x32xf32>
    %c0_5 = arith.constant 0 : index
    %c0_6 = arith.constant 0 : index
    %6 = vector.load %arg2[%c0_5, %c0_6] : memref<320x32xbf16, #tpu.memory_space<vmem>>, vector<320x32xbf16>
    %c0_7 = arith.constant 0 : index
    %c0_8 = arith.constant 0 : index
    %c0_9 = arith.constant 0 : index
    %7 = vector.load %arg4[%c0_7, %c0_8, %c0_9] : memref<3x32x32xbf16, #tpu.memory_space<vmem>>, vector<1x32x32xbf16>
    %8 = vector.shape_cast %7 : vector<1x32x32xbf16> to vector<32x32xbf16>
    %cst_10 = arith.constant dense<0.000000e+00> : vector<320x32xf32>
    %9 = tpu.matmul %6, %8, %cst_10 {dimension_numbers = #tpu.dot_dimension_numbers<[1], [0], [0], [1], [0, 0, 1, 1], [], []>} : vector<320x32xbf16>, vector<32x32xbf16>, vector<320x32xf32> -> vector<320x32xf32>
    %10 = arith.truncf %9 : vector<320x32xf32> to vector<320x32xbf16>
    %c0_11 = arith.constant 0 : index
    %c0_12 = arith.constant 0 : index
    %c0_13 = arith.constant 0 : index
    %11 = vector.load %arg1[%c0_11, %c0_12, %c0_13] : memref<3x160x320xbf16, #tpu.memory_space<vmem>>, vector<1x160x320xbf16>
    %12 = vector.shape_cast %11 : vector<1x160x320xbf16> to vector<160x320xbf16>
    %cst_14 = arith.constant dense<0.000000e+00> : vector<160x32xf32>
    %13 = tpu.matmul %12, %10, %cst_14 {dimension_numbers = #tpu.dot_dimension_numbers<[1], [0], [0], [1], [0, 0, 1, 1], [], []>} : vector<160x320xbf16>, vector<320x32xbf16>, vector<160x32xf32> -> vector<160x32xf32>
    %14 = arith.addf %5, %13 : vector<160x32xf32>
    %c1 = arith.constant 1 : index
    %c0_15 = arith.constant 0 : index
    %c0_16 = arith.constant 0 : index
    %15 = vector.load %arg4[%c1, %c0_15, %c0_16] : memref<3x32x32xbf16, #tpu.memory_space<vmem>>, vector<1x32x32xbf16>
    %16 = vector.shape_cast %15 : vector<1x32x32xbf16> to vector<32x32xbf16>
    %cst_17 = arith.constant dense<0.000000e+00> : vector<320x32xf32>
    %17 = tpu.matmul %6, %16, %cst_17 {dimension_numbers = #tpu.dot_dimension_numbers<[1], [0], [0], [1], [0, 0, 1, 1], [], []>} : vector<320x32xbf16>, vector<32x32xbf16>, vector<320x32xf32> -> vector<320x32xf32>
    %18 = arith.truncf %17 : vector<320x32xf32> to vector<320x32xbf16>
    %c1_18 = arith.constant 1 : index
    %c0_19 = arith.constant 0 : index
    %c0_20 = arith.constant 0 : index
    %19 = vector.load %arg1[%c1_18, %c0_19, %c0_20] : memref<3x160x320xbf16, #tpu.memory_space<vmem>>, vector<1x160x320xbf16>
    %20 = vector.shape_cast %19 : vector<1x160x320xbf16> to vector<160x320xbf16>
    %cst_21 = arith.constant dense<0.000000e+00> : vector<160x32xf32>
    %21 = tpu.matmul %20, %18, %cst_21 {dimension_numbers = #tpu.dot_dimension_numbers<[1], [0], [0], [1], [0, 0, 1, 1], [], []>} : vector<160x320xbf16>, vector<320x32xbf16>, vector<160x32xf32> -> vector<160x32xf32>
    %22 = arith.addf %14, %21 : vector<160x32xf32>
    %c2 = arith.constant 2 : index
    %c0_22 = arith.constant 0 : index
    %c0_23 = arith.constant 0 : index
    %23 = vector.load %arg4[%c2, %c0_22, %c0_23] : memref<3x32x32xbf16, #tpu.memory_space<vmem>>, vector<1x32x32xbf16>
    %24 = vector.shape_cast %23 : vector<1x32x32xbf16> to vector<32x32xbf16>
    %cst_24 = arith.constant dense<0.000000e+00> : vector<320x32xf32>
    %25 = tpu.matmul %6, %24, %cst_24 {dimension_numbers = #tpu.dot_dimension_numbers<[1], [0], [0], [1], [0, 0, 1, 1], [], []>} : vector<320x32xbf16>, vector<32x32xbf16>, vector<320x32xf32> -> vector<320x32xf32>
    %26 = arith.truncf %25 : vector<320x32xf32> to vector<320x32xbf16>
    %c2_25 = arith.constant 2 : index
    %c0_26 = arith.constant 0 : index
    %c0_27 = arith.constant 0 : index
    %27 = vector.load %arg1[%c2_25, %c0_26, %c0_27] : memref<3x160x320xbf16, #tpu.memory_space<vmem>>, vector<1x160x320xbf16>
    %28 = vector.shape_cast %27 : vector<1x160x320xbf16> to vector<160x320xbf16>
    %cst_28 = arith.constant dense<0.000000e+00> : vector<160x32xf32>
    %29 = tpu.matmul %28, %26, %cst_28 {dimension_numbers = #tpu.dot_dimension_numbers<[1], [0], [0], [1], [0, 0, 1, 1], [], []>} : vector<160x320xbf16>, vector<320x32xbf16>, vector<160x32xf32> -> vector<160x32xf32>
    %30 = arith.addf %22, %29 : vector<160x32xf32>
    %cst_29 = arith.constant 0.000000e+00 : f32
    %31 = vector.broadcast %cst_29 : f32 to vector<160x32xf32>
    %32 = arith.maximumf %30, %31 : vector<160x32xf32>
    %33 = arith.truncf %32 : vector<160x32xf32> to vector<160x32xbf16>
    %c0_30 = arith.constant 0 : index
    %c0_31 = arith.constant 0 : index
    %34 = vector.load %arg8[%c0_30, %c0_31] : memref<160x32xbf16, #tpu.memory_space<vmem>>, vector<160x32xbf16>
    tpu.vector_store %arg8[%c0_30, %c0_31], %33 {strides = array<i32>} : memref<160x32xbf16, #tpu.memory_space<vmem>>, vector<160x32xbf16>,
    %c0_32 = arith.constant 0 : index
    %c0_33 = arith.constant 0 : index
    %35 = vector.load %arg7[%c0_32, %c0_33] : memref<160x1xf32, #tpu.memory_space<vmem>>, vector<160x1xf32>
    %36 = vector.broadcast %35 : vector<160x1xf32> to vector<160x32xf32>
    %37 = arith.mulf %32, %36 : vector<160x32xf32>
    %cst_34 = arith.constant dense<0.000000e+00> : vector<32xf32>
    %38 = vector.multi_reduction <add>, %37, %cst_34 [0] : vector<160x32xf32> to vector<32xf32>
    %39 = vector.shape_cast %38 : vector<32xf32> to vector<1x32xf32>
    %40 = arith.mulf %37, %37 : vector<160x32xf32>
    %cst_35 = arith.constant dense<0.000000e+00> : vector<32xf32>
    %41 = vector.multi_reduction <add>, %40, %cst_35 [0] : vector<160x32xf32> to vector<32xf32>
    %42 = vector.shape_cast %41 : vector<32xf32> to vector<1x32xf32>
    %43 = tpu.concatenate %39, %42 in 0 : vector<1x32xf32>, vector<1x32xf32> -> vector<2x32xf32>
    %44 = vector.shape_cast %43 : vector<2x32xf32> to vector<1x2x32xf32>
    %c0_36 = arith.constant 0 : index
    %c0_37 = arith.constant 0 : index
    %c0_38 = arith.constant 0 : index
    %45 = vector.load %arg9[%c0_36, %c0_37, %c0_38] : memref<1x2x32xf32, #tpu.memory_space<vmem>>, vector<1x2x32xf32>
    tpu.vector_store %arg9[%c0_36, %c0_37, %c0_38], %44 {strides = array<i32>} : memref<1x2x32xf32, #tpu.memory_space<vmem>>, vector<1x2x32xf32>,
    return
  }
  func.func @transform_0(%arg0: i32) -> (i32, i32, i32) {
    %c0_i32 = arith.constant 0 : i32
    %c0_i32_0 = arith.constant 0 : i32
    %c0_i32_1 = arith.constant 0 : i32
    return %c0_i32, %arg0, %c0_i32_0 : i32, i32, i32
  }
  func.func @transform_1(%arg0: i32) -> (i32, i32) {
    %c0_i32 = arith.constant 0 : i32
    %c0_i32_0 = arith.constant 0 : i32
    %c0_i32_1 = arith.constant 0 : i32
    return %c0_i32, %c0_i32_0 : i32, i32
  }
  func.func @transform_2(%arg0: i32) -> (i32, i32) {
    %c0_i32 = arith.constant 0 : i32
    %c0_i32_0 = arith.constant 0 : i32
    return %arg0, %c0_i32 : i32, i32
  }
  func.func @transform_3(%arg0: i32) -> (i32, i32, i32) {
    %c0_i32 = arith.constant 0 : i32
    %c0_i32_0 = arith.constant 0 : i32
    %c0_i32_1 = arith.constant 0 : i32
    %c0_i32_2 = arith.constant 0 : i32
    return %c0_i32, %c0_i32_0, %c0_i32_1 : i32, i32, i32
  }
  func.func @transform_4(%arg0: i32) -> (i32, i32) {
    %c0_i32 = arith.constant 0 : i32
    %c0_i32_0 = arith.constant 0 : i32
    %c0_i32_1 = arith.constant 0 : i32
    return %c0_i32, %c0_i32_0 : i32, i32
  }
  func.func @transform_5(%arg0: i32) -> (i32, i32) {
    %c0_i32 = arith.constant 0 : i32
    %c0_i32_0 = arith.constant 0 : i32
    %c0_i32_1 = arith.constant 0 : i32
    return %c0_i32, %c0_i32_0 : i32, i32
  }
  func.func @transform_6(%arg0: i32) -> (i32, i32) {
    %c0_i32 = arith.constant 0 : i32
    %c0_i32_0 = arith.constant 0 : i32
    return %arg0, %c0_i32 : i32, i32
  }
  func.func @transform_7(%arg0: i32) -> (i32, i32) {
    %c0_i32 = arith.constant 0 : i32
    %c0_i32_0 = arith.constant 0 : i32
    return %arg0, %c0_i32 : i32, i32
  }
  func.func @transform_8(%arg0: i32) -> (i32, i32, i32) {
    %c0_i32 = arith.constant 0 : i32
    %c0_i32_0 = arith.constant 0 : i32
    %c0_i32_1 = arith.constant 0 : i32
    return %arg0, %c0_i32, %c0_i32_0 : i32, i32, i32
  }
}

</mosaic_0001>

<bundles_post_ra>
// kernel: tpu_custom_call.1
= control target key start
LH: loop header
LB: loop body
LE: loop exit
PB: predicated region body
PF: predicated region fallthrough
CT: control target
= control target key end

     0   :  { %14 = vsyncpa [#allocation3], 0  ;;  %s5294_s0 = inlined_call_operand.hbm [shape: bf16[3,320,320], index: 0, kind: input, shape index: {}]   ;;  %s5295_s1 = inlined_call_operand.vmem [shape: bf16[320,32], index: 1, kind: input, shape index: {}]   ;;  %s5296_s2 = inlined_call_operand.vmem [shape: bf16[320,32], index: 2, kind: input, shape index: {}]   ;;  %s5297_s3 = inlined_call_operand.vmem [shape: bf16[3,32,32], index: 3, kind: input, shape index: {}]   ;;  %s5298_s4 = inlined_call_operand.vmem [shape: bf16[32,32], index: 4, kind: input, shape index: {}]   ;;  %s5299_s5 = inlined_call_operand.vmem [shape: f32[1,32], index: 5, kind: input, shape index: {}]   ;;  %s5300_s6 = inlined_call_operand.vmem [shape: f32[320,1], index: 6, kind: input, shape index: {}]   ;;  %s5301_s7 = inlined_call_operand.vmem [shape: bf16[320,32], index: 7, kind: output, shape index: {0}]   ;;  %s5302_s8 = inlined_call_operand.hbm [shape: f32[2,2,32], index: 8, kind: output, shape index: {1}]  }
   0x1   :  { %16 = vsyncpa [#allocation3 + $0x1], 0 }
   0x2   :  { %17 = vsyncpa [#allocation4], 0 }
   0x3   :  { %19 = vsyncpa [#allocation4 + $0x1], 0  ;;  %s3989_s27 = smov 0   ;;  %s3991_s28 = smov 0  }
   0x4   :  { %s3993_s29 = smov 0   ;;  %s3995_s30 = smov 0  }
   0x5 LB: > { %5306 = sst [smem:[#allocation11_spill]] %s3931_s29  ;;  %s4010_s9 = sadd.s32 4294967295, %s3935_s30   ;;  %s3935_s30 = sphi %s3995_s30, %s5401_s30   ;;  %s3931_s29 = sphi %s3993_s29, %s5403_s29   ;;  %s3927_s28 = sphi %s3991_s28, %s5405_s28   ;;  %s3923_s27 = sphi %s3989_s27, %s5404_s27  }
   0x6   : > { %s2942_s10 = sadd.s32 4294967294, %s3935_s30   ;;  %s4014_s11 = sadd.s32 1, %s3935_s30  }
   0x7   : > { %5307 = sst [smem:[#allocation12_spill]] %s4014_s11  ;;  %s32_s12 = sadd.s32 1, %s3931_s29 }
   0x8   : > { %s29_s13 = ssub.s32 %s3935_s30, %s4014_s11  ;;  %p39_p0 = scmp.ne.s32.totalorder %s3931_s29, %s3927_s28 }
   0x9   : > { %p30_p1 = scmp.eq.s32.totalorder %s29_s13, 0  ;;  %p40_p2 = scmp.eq.s32.totalorder %s3935_s30, 0 }
   0xa   : > { %p45_p3 = scmp.ne.s32.totalorder %s3927_s28, %s3923_s27  ;;  %p46_p4 = scmp.eq.s32.totalorder %s4010_s9, 0 }
   0xb   : > { %s4026_s14 = scalar_select %p30_p1, %s3931_s29, %s32_s12  }
   0xc   : > { %p4028_p5 = por %p40_p2, %p39_p0  ;;  %p4032_p6 = por %p46_p4, %p45_p3 }
   0xd   : > { %5308 = sst [smem:[#allocation13_spill]] %s4026_s14  ;;  %p231_p7 = scmp.eq.s32.totalorder %s4010_s9, 1 }
   0xe   : > { %p237_p8 = scmp.eq.s32.totalorder %s2942_s10, 1  ;;  %p2944_p11 = scmp.ge.s32.totalorder %s3935_s30, 2 }
   0xf   : > { %p4037_p9 = por %p231_p7, %p39_p0 }
  0x10   : > { %p4041_p10 = por %p237_p8, %p45_p3  ;;  %265 = sbr.rel (%p2944_p11) target bundleno = 37 (0x25), region = 32 }
  0x15   : > { %s269_s19 = sand.u32 1, %s3931_s29   ;;  %s3803_s21 = smul.u32 240, %s3935_s30 }
  0x16   : > { %s3785_s20 = smul.u32 720, %s269_s19  ;;  %s3937_s22 = smov 7680  }
  0x17   : > { %3789 = sst [smem:[#allocation7]] (%p4028_p5), %s3937_s22  ;;  %s279_s25 = scalar_lea.hbm %s5294_s0, %s3803_s21 }
  0x18   : > { %s273_s26 = scalar_lea.vmem [#allocation2], %s3785_s20  ;;  %s292_s13 = sshll.u32 %s279_s25, 4  ;;  %s293_s13 = int_to_ptr.hbm [resolvable:$true] %s292_s13 }
  0x19   : > { %s294_s10 = sshll.u32 %s273_s26, 4  ;;  %s3938_s29 = smov 3840   ;;  %s295_s10 = int_to_ptr.vmem [resolvable:$true] %s294_s10 }
  0x1a   : > { %s3788_s12 = scalar_select %p4028_p5, [#allocation0], [#allocation8] }
  0x1b   : > { %3790 = sst [smem:[#allocation7 + $0x1]] (%p4028_p5), %s3938_s29  ;;  %s3939_s11 = smov 20  }
  0x1c   : > { %s284_s14 = sld [smem:[%s3788_s12]]   ;;  %s3940_s22 = smov 192  }
  0x1d   : > { %3791 = sst [smem:[#allocation7 + $0x2]] (%p4028_p5), %s3939_s11  ;;  %s3941_s21 = smov 12  }
  0x1e   : > { %3792 = sst [smem:[#allocation7 + $0x3]] (%p4028_p5), %s3940_s22  ;;  %s270_s24 = scalar_lea.sflag [#allocation3], %s269_s19 }
  0x1f   : > { %3793 = sst [smem:[#allocation7 + $0x4]] (%p4028_p5), %s3940_s22  ;;  %s3942_s25 = smov [#allocation6]  }
  0x20   : > { %3794 = sst [smem:[#allocation7 + $0x5]] (%p4028_p5), %s3941_s21 }
  0x22   : > { %s2946_s20 = sshll.u32 %s284_s14, 26 }
  0x23   : > { %s2947_s23 = sadd.s32 134217728, %s2946_s20 }
  0x24   : > { %3795 = dma.general (%p4028_p5), %s293_s13, 11520, %s295_s10, %s270_s24, %s3942_s25, [#allocation7], %s2947_s23, 0  }
  0x25 PF: > { %p2948_p12 = scmp.ge.s32.totalorder %s3935_s30, 1  ;;  %p333_p13 = scmp.lt.s32.totalorder %s3935_s30, 3 }
  0x27   : > { %p334_p0 = pnand %p2948_p12, %p333_p13 }
  0x29   : > { %337 = sbr.rel (%p334_p0) target bundleno = 1719 (0x6b7), region = 48 }
  0x2e   : > { %s4072_s29 = sand.u32 1, %s3927_s28  }
  0x2f   : > { %s3787_s11 = smul.u32 720, %s4072_s29  ;;  %s340_s14 = scalar_lea.sflag [#allocation3], %s4072_s29 }
  0x31   : > { %s4076_s26 = scalar_lea.vmem [#allocation2], %s3787_s11 }
  0x32   : > { %3914 = dma.done.wait (%p4032_p6), %s340_s14, 11520  }
  0x33   : > { %3916 = vsyncadd (%p4032_p6), %s340_s14, 4294955776  ;;  %v3690_v0 = vld [vmem:[%s5297_s3 + $0x8] sm:$0xff]  ;;  %v3689_v1 = vld [vmem:[%s5297_s3] sm:$0xff]  ;;  %vm502_vm0 = vcmask 261120   ;;  %s393_s21 = smul.u32 20, %s4010_s9  ;;  %vm1127_vm1 = vcmask 523264  }
  0x34   : > { %814 = vmatpush.bf16.msra.mxu1 %v3690_v0  ;;  %v4091_v2 = vld [vmem:[%s5295_s1] sm:$0xff]  ;;  %v4098_v3 = vld [vmem:[%s5295_s1 + $0x8] sm:$0xff]  ;;  %v4105_v4 = vld [vmem:[%s5295_s1 + $0x10] sm:$0xff]  ;;  %vm2523_vm2 = vcmask 257024   ;;  %vm2794_vm3 = vcmask 1040384   ;;  %vm2796_vm4 = vcmask 254976  }
  0x35   : > { %v4112_v5 = vld [vmem:[%s5295_s1 + $0x18] sm:$0xff]  ;;  %v4119_v6 = vld [vmem:[%s5295_s1 + $0x20] sm:$0xff]  ;;  %v4126_v7 = vld [vmem:[%s5295_s1 + $0x28] sm:$0xff]  ;;  %p394_p1 = scmp.lt.s32.totalorder %s393_s21, 39  ;;  %s3889_s20 = scalar_lea.hbm %s5302_s8, 4 }
  0x36   : > { %v4133_v8 = vld [vmem:[%s5295_s1 + $0x30] sm:$0xff]  ;;  %v4140_v9 = vld [vmem:[%s5295_s1 + $0x38] sm:$0xff]  ;;  %v4147_v10 = vld [vmem:[%s5295_s1 + $0x40] sm:$0xff] }
  0x37   : > { %v4160_v14 = vld [vmem:[%s5295_s1 + $0x48] sm:$0xff]  ;;  %v4167_v18 = vld [vmem:[%s5295_s1 + $0x50] sm:$0xff]  ;;  %v4174_v22 = vld [vmem:[%s5295_s1 + $0x58] sm:$0xff]  ;;  %s5407_s21 = smov (!%p394_p1, %s393_s21), 39 }
  0x38   : > { %815 = vmatpush.bf16.msra.mxu1 %v3689_v1  ;;  %v4181_v26 = vld [vmem:[%s5295_s1 + $0x60] sm:$0xff]  ;;  %v4188_v29 = vld [vmem:[%s5295_s1 + $0x68] sm:$0xff]  ;;  %v4195_v32 = vld [vmem:[%s5295_s1 + $0x70] sm:$0xff]  ;;  %s2950_s14 = sshll.u32 %s5407_s21, 2  ;;  %s2951_s19 = sshll.u32 %s5407_s21, 3 }
  0x39   : > { %v4202_v35 = vld [vmem:[%s5295_s1 + $0x78] sm:$0xff]  ;;  %v4212_v40 = vld [vmem:[%s5295_s1 + $0x80] sm:$0xff]  ;;  %v3668_v42 = vld [vmem:[%s5298_s4 + $0x8] sm:$0xff]  ;;  %s4230_s13 = scalar_lea.vmem %s5296_s2, %s2950_s14  ;;  %s5074_s24 = scalar_lea.vmem %s5301_s7, %s2950_s14 }
  0x3a   : > { %539 = vmatpush.bf16.msra.mxu0 %v3668_v42  ;;  %v3667_v44 = vld [vmem:[%s5298_s4] sm:$0xff]  ;;  %v4239_v48 = vld [vmem:[%s5295_s1 + $0x88] sm:$0xff]  ;;  %v4257_v55 = vld [vmem:[%s5295_s1 + $0x90] sm:$0xff]  ;;  %s3654_s21 = sshll.u32 %s4010_s9, 1  ;;  %s2804_s9 = scalar_lea.sflag [#allocation4], %s4072_s29 }
  0x3b   : > { %3099 = vmatmul.msk.bf16.vlgmr.msra.gmra.mxu1 %vm502_vm0, %v4091_v2  ;;  %v3657_v47 = vld [vmem:[%s4230_s13] sm:$0xff]  ;;  %v3692_v51 = vld [vmem:[%s4076_s26 + $0x8] sm:$0xf0]  ;;  %v3133_v57 = vld [vmem:[%s4076_s26 + $0x18] sm:$0xf]  ;;  %s2818_s11 = scalar_lea.hbm %s5302_s8, %s3654_s21 }
  0x3c   : > { %v3121_v50 = vld [vmem:[%s4076_s26] sm:$0xf]  ;;  %v3658_v54 = vld [vmem:[%s4230_s13 + $0x8] sm:$0xff]  ;;  %v3695_v58 = vld [vmem:[%s4076_s26 + $0x20] sm:$0xf0]  ;;  %s2822_s10 = sshll.u32 %s2818_s11, 4  ;;  %s2823_s10 = int_to_ptr.hbm [resolvable:$true] %s2822_s10 }
  0x3d   : > { %v3122_v52 = vor.u32 %v3692_v51, %v3121_v50  ;;  %v3134_v59 = vor.u32 %v3695_v58, %v3133_v57  ;;  %v3659_v61 = vld [vmem:[%s4230_s13 + $0x10] sm:$0xff]  ;;  %v4272_v62 = vld [vmem:[%s5295_s1 + $0x98] sm:$0xff]  ;;  %s3883_s12 = sshra.s32 %s2823_s10, 4  ;;  %s3884_s12 = int_to_ptr.hbm [resolvable:$true] %s3883_s12 }
  0x3e   : > { %540 = vmatpush.bf16.msra.mxu0 %v3667_v44  ;;  %v3145_v0 = vld [vmem:[%s4076_s26 + $0x30] sm:$0xf]  ;;  %v3698_v1 = vld [vmem:[%s4076_s26 + $0x38] sm:$0xf0]  ;;  %v3205_v58 = vld [vmem:[%s4076_s26 + $0xa8] sm:$0xf]  ;;  %p3890_p5 = scmp.lt.s32.totalorder %s3884_s12, %s5302_s8 }
  0x3f   : > { %v3193_v42 = vld [vmem:[%s4076_s26 + $0x90] sm:$0xf] }
  0x41   : > { %3001 = vmatmul.msk.bf16.vlgmr.msra.gmra.mxu0 %vm502_vm0, %v3657_v47  ;;  %v3664_v47 = vld [vmem:[%s4230_s13 + $0x38] sm:$0xff] }
  0x4b   : > { %3100 = vmatmul.msk.bf16.gmra.mxu1 %vm502_vm0, %v4098_v3 }
  0x51   : > { %3002 = vmatmul.msk.bf16.gmra.mxu0 %vm502_vm0, %v3658_v54 }
  0x5b   : > { %3101 = vmatmul.msk.bf16.gmra.mxu1 %vm502_vm0, %v4105_v4 }
  0x61   : > { %3003 = vmatmul.msk.bf16.gmra.mxu0 %vm502_vm0, %v3659_v61 }
  0x6b   : > { %3102 = vmatmul.msk.bf16.gmra.mxu1 %vm502_vm0, %v4112_v5 }
  0x7b   : > { %3103 = vmatmul.msk.bf16.gmra.mxu1 %vm502_vm0, %v4119_v6 }
  0x8b   : > { %3104 = vmatmul.msk.bf16.gmra.mxu1 %vm502_vm0, %v4126_v7 }
  0x9b   : > { %3105 = vmatmul.msk.bf16.gmra.mxu1 %vm502_vm0, %v4133_v8 }
  0xab   : > { %3106 = vmatmul.msk.bf16.gmra.mxu1 %vm502_vm0, %v4140_v9 }
  0xb8   : > { %v4149_v11 = vpop.f32.mrf.mxu1 }
  0xbb   : > { %3107 = vmatmul.msk.bf16.gmra.mxu1 %vm502_vm0, %v4147_v10 }
  0xc0   : > { %v4153_v12 = vpop.f32.mrf.mxu1 }
  0xc1   : > { %v917_v13 = vpack.c.bf16 %v4153_v12, %v4149_v11  ;;  %v3146_v11 = vor.u32 %v3698_v1, %v3145_v0  ;;  %v4300_v1 = vpop.f32.mrf.mxu0 }
  0xc8   : > { %v822_v15 = vpop.f32.mrf.mxu1 }
  0xcb   : > { %3108 = vmatmul.msk.bf16.gmra.mxu1 %vm502_vm0, %v4160_v14 }
  0xd0   : > { %v824_v16 = vpop.f32.mrf.mxu1 }
  0xd1   : > { %v918_v17 = vpack.c.bf16 %v824_v16, %v822_v15  ;;  %v3157_v16 = vld [vmem:[%s4076_s26 + $0x48] sm:$0xf] }
  0xd8   : > { %v827_v19 = vpop.f32.mrf.mxu1 }
  0xdb   : > { %3109 = vmatmul.msk.bf16.gmra.mxu1 %vm502_vm0, %v4167_v18 }
  0xe0   : > { %v829_v20 = vpop.f32.mrf.mxu1 }
  0xe1   : > { %v919_v21 = vpack.c.bf16 %v829_v20, %v827_v19 }
  0xe8   : > { %v832_v23 = vpop.f32.mrf.mxu1 }
  0xeb   : > { %3110 = vmatmul.msk.bf16.gmra.mxu1 %vm502_vm0, %v4174_v22 }
  0xf0   : > { %v834_v24 = vpop.f32.mrf.mxu1 }
  0xf1   : > { %v920_v25 = vpack.c.bf16 %v834_v24, %v832_v23  ;;  %v3169_v24 = vld [vmem:[%s4076_s26 + $0x60] sm:$0xf] }
  0xf8   : > { %v837_v27 = vpop.f32.mrf.mxu1 }
  0xfb   : > { %3111 = vmatmul.msk.bf16.gmra.mxu1 %vm502_vm0, %v4181_v26 }
 0x100   : > { %v839_v28 = vpop.f32.mrf.mxu1 }
 0x101   : > { %v921_v45 = vpack.c.bf16 %v839_v28, %v837_v27 }
 0x108   : > { %v842_v30 = vpop.f32.mrf.mxu1 }
 0x10b   : > { %3112 = vmatmul.msk.bf16.gmra.mxu1 %vm502_vm0, %v4188_v29 }
 0x110   : > { %v844_v31 = vpop.f32.mrf.mxu1 }
 0x111   : > { %v922_v43 = vpack.c.bf16 %v844_v31, %v842_v30  ;;  %v3662_v30 = vld [vmem:[%s4230_s13 + $0x28] sm:$0xff] }
 0x118   : > { %v847_v33 = vpop.f32.mrf.mxu1 }
 0x11b   : > { %3113 = vmatmul.msk.bf16.gmra.mxu1 %vm502_vm0, %v4195_v32 }
 0x120   : > { %v849_v34 = vpop.f32.mrf.mxu1 }
 0x121   : > { %v923_v39 = vpack.c.bf16 %v849_v34, %v847_v33  ;;  %v3181_v33 = vld [vmem:[%s4076_s26 + $0x78] sm:$0xf]  ;;  %v3707_v34 = vld [vmem:[%s4076_s26 + $0x80] sm:$0xf0] }
 0x128   : > { %v852_v36 = vpop.f32.mrf.mxu1 }
 0x12b   : > { %3114 = vmatmul.msk.bf16.gmra.mxu1 %vm502_vm0, %v4202_v35 }
 0x130   : > { %v854_v37 = vpop.f32.mrf.mxu1 }
 0x131   : > { %v924_v38 = vpack.c.bf16 %v854_v37, %v852_v36  ;;  %v3182_v36 = vor.u32 %v3707_v34, %v3181_v33  ;;  %v3694_v33 = vld [vmem:[%s4076_s26 + $0x1c] sm:$0xf]  ;;  %v3135_v34 = vld [vmem:[%s4076_s26 + $0x24] sm:$0xf0] }
 0x133   : > { %1158 = vmatpush.bf16.msra.mxu2 %v924_v38  ;;  %v3663_v38 = vld [vmem:[%s4230_s13 + $0x30] sm:$0xff] }
 0x137   : > { %1159 = vmatpush.bf16.msra.mxu2 %v923_v39 }
 0x138   : > { %v4214_v41 = vpop.f32.mrf.mxu1 }
 0x13b   : > { %3115 = vmatmul.msk.bf16.gmra.mxu1 %vm502_vm0, %v4212_v40  ;;  %1160 = vmatpush.bf16.msra.mxu2 %v922_v43  ;;  %v3710_v43 = vld [vmem:[%s4076_s26 + $0x98] sm:$0xf0] }
 0x13c   : > { %v3194_v44 = vor.u32 %v3710_v43, %v3193_v42 }
 0x13f   : > { %1161 = vmatpush.bf16.msra.mxu2 %v921_v45 }
 0x140   : > { %v4232_v46 = vpop.f32.mrf.mxu1 }
 0x143   : > { %1162 = vmatpush.bf16.msra.mxu2 %v920_v25  ;;  %v3704_v25 = vld [vmem:[%s4076_s26 + $0x68] sm:$0xf0] }
 0x144   : > { %v3170_v27 = vor.u32 %v3704_v25, %v3169_v24 }
 0x147   : > { %1163 = vmatpush.bf16.msra.mxu2 %v919_v21  ;;  %v3661_v21 = vld [vmem:[%s4230_s13 + $0x20] sm:$0xff] }
 0x148   : > { %v4241_v49 = vpop.f32.mrf.mxu1 }
 0x14b   : > { %3116 = vmatmul.msk.bf16.gmra.mxu1 %vm502_vm0, %v4239_v48  ;;  %1164 = vmatpush.bf16.msra.mxu2 %v918_v17  ;;  %v3701_v17 = vld [vmem:[%s4076_s26 + $0x50] sm:$0xf0] }
 0x14c   : > { %v3158_v19 = vor.u32 %v3701_v17, %v3157_v16  ;;  %v3722_v17 = vld [vmem:[%s5297_s3 + $0x18] sm:$0xff] }
 0x14f   : > { %1165 = vmatpush.bf16.msra.mxu2 %v917_v13  ;;  %v3660_v13 = vld [vmem:[%s4230_s13 + $0x18] sm:$0xff] }
 0x150   : > { %v4250_v53 = vpop.f32.mrf.mxu1  ;;  %3004 = vmatmul.msk.bf16.gmra.mxu0 %vm502_vm0, %v3660_v13  ;;  %v3665_v13 = vld [vmem:[%s4230_s13 + $0x40] sm:$0xff] }
 0x151   : > { %v926_v16 = vpack.c.bf16 %v4250_v53, %v4241_v49  ;;  %v3721_v49 = vld [vmem:[%s5297_s3 + $0x10] sm:$0xff] }
 0x152   : > { %1166 = vmatmul.bf16.vlgmr.msra.gmra.mxu2 %v3122_v52 }
 0x153   : > { %1378 = vmatpush.bf16.msrb.mxu2 %v3722_v17  ;;  %v3159_v17 = vld [vmem:[%s4076_s26 + $0x54] sm:$0xf0] }
 0x157   : > { %1379 = vmatpush.bf16.msrb.mxu2 %v3721_v49  ;;  %v3171_v49 = vld [vmem:[%s4076_s26 + $0x6c] sm:$0xf0] }
 0x158   : > { %v4259_v56 = vpop.f32.mrf.mxu1 }
 0x15b   : > { %3117 = vmatmul.msk.bf16.gmra.mxu1 %vm502_vm0, %v4257_v55 }
 0x160   : > { %v4265_v60 = vpop.f32.mrf.mxu1  ;;  %3005 = vmatmul.msk.bf16.gmra.mxu0 %vm502_vm0, %v3661_v21  ;;  %v3716_v21 = vld [vmem:[%s4076_s26 + $0xc8] sm:$0xf0] }
 0x162   : > { %1171 = vmatmul.bf16.gmra.mxu2 %v3134_v59  ;;  %v3713_v59 = vld [vmem:[%s4076_s26 + $0xb0] sm:$0xf0] }
 0x163   : > { %v3206_v61 = vor.u32 %v3713_v59, %v3205_v58 }
 0x168   : > { %v872_v63 = vpop.f32.mrf.mxu1 }
 0x16b   : > { %3118 = vmatmul.msk.bf16.gmra.mxu1 %vm502_vm0, %v4272_v62 }
 0x170   : > { %v874_v12 = vpop.f32.mrf.mxu1  ;;  %3006 = vmatmul.msk.bf16.gmra.mxu0 %vm502_vm0, %v3662_v30  ;;  %v3229_v30 = vld [vmem:[%s4076_s26 + $0xd8] sm:$0xf] }
 0x171   : > { %v928_v0 = vpack.c.bf16 %v874_v12, %v872_v63  ;;  %v4310_v63 = vpop.f32.mrf.mxu0 }
 0x172   : > { %1176 = vmatmul.bf16.gmra.mxu2 %v3146_v11 }
 0x178   : > { %v877_v15 = vpop.f32.mrf.mxu1 }
 0x179   : > { %v4324_v24 = vpop.f32.mrf.mxu0 }
 0x180   : > { %v879_v20 = vpop.f32.mrf.mxu1  ;;  %3007 = vmatmul.msk.bf16.gmra.mxu0 %vm502_vm0, %v3663_v38  ;;  %v3138_v38 = vor.u32 %v3694_v33, %v3135_v34  ;;  %v3183_v34 = vld [vmem:[%s4076_s26 + $0x84] sm:$0xf0] }
 0x181   : > { %v929_v57 = vpack.c.bf16 %v879_v20, %v877_v15  ;;  %v927_v15 = vpack.c.bf16 %v4265_v60, %v4259_v56  ;;  %v925_v20 = vpack.c.bf16 %v4232_v46, %v4214_v41  ;;  %v3691_v56 = vld [vmem:[%s4076_s26 + $0x4] sm:$0xf]  ;;  %v3123_v60 = vld [vmem:[%s4076_s26 + $0xc] sm:$0xf0]  ;;  %v4330_v46 = vpop.f32.mrf.mxu0 }
 0x182   : > { %1181 = vmatmul.bf16.gmra.mxu2 %v3158_v19  ;;  %v3217_v19 = vld [vmem:[%s4076_s26 + $0xc0] sm:$0xf] }
 0x183   : > { %v3218_v53 = vor.u32 %v3716_v21, %v3217_v19  ;;  %v3129_v19 = vld [vmem:[%s4076_s26 + $0x8] sm:$0xf] }
 0x188   : > { %v882_v23 = vpop.f32.mrf.mxu1 }
 0x190   : > { %v884_v28 = vpop.f32.mrf.mxu1  ;;  %3008 = vmatmul.msk.bf16.gmra.mxu0 %vm502_vm0, %v3664_v47  ;;  %v3697_v47 = vld [vmem:[%s4076_s26 + $0x34] sm:$0xf] }
 0x191   : > { %v930_v52 = vpack.c.bf16 %v884_v28, %v882_v23  ;;  %v3126_v23 = vor.u32 %v3691_v56, %v3123_v60 }
 0x192   : > { %1186 = vmatmul.bf16.gmra.mxu2 %v3170_v27  ;;  %v3666_v27 = vld [vmem:[%s4230_s13 + $0x48] sm:$0xff]  ;;  %s4962_s13 = scalar_lea.vmem %s5300_s6, %s2951_s19 }
 0x198   : > { %v887_v31 = vpop.f32.mrf.mxu1 }
 0x1a0   : > { %v889_v37 = vpop.f32.mrf.mxu1  ;;  %3009 = vmatmul.msk.bf16.gmra.mxu0 %vm502_vm0, %v3665_v13 }
 0x1a1   : > { %v931_v51 = vpack.c.bf16 %v889_v37, %v887_v31  ;;  %v3719_v31 = vld [vmem:[%s4076_s26 + $0xe0] sm:$0xf0] }
 0x1a2   : > { %1191 = vmatmul.bf16.gmra.mxu2 %v3182_v36  ;;  %v3230_v37 = vor.u32 %v3719_v31, %v3229_v30  ;;  %v3706_v31 = vld [vmem:[%s4076_s26 + $0x7c] sm:$0xf] }
 0x1a8   : > { %v892_v39 = vpop.f32.mrf.mxu1 }
 0x1b0   : > { %v894_v45 = vpop.f32.mrf.mxu1  ;;  %3010 = vmatmul.msk.bf16.gmra.mxu0 %vm502_vm0, %v3666_v27 }
 0x1b1   : > { %v932_v50 = vpack.c.bf16 %v894_v45, %v892_v39  ;;  %v4338_v39 = vpop.f32.mrf.mxu0 }
 0x1b2   : > { %1196 = vmatmul.bf16.gmra.mxu2 %v3194_v44 }
 0x1b3   : > { %1217 = vmatpush.bf16.msra.mxu3 %v932_v50  ;;  %v3147_v50 = vld [vmem:[%s4076_s26 + $0x3c] sm:$0xf0] }
 0x1b7   : > { %1218 = vmatpush.bf16.msra.mxu3 %v931_v51 }
 0x1b8   : > { %v4296_v54 = vpop.f32.mrf.mxu1 }
 0x1b9   : > { %v4342_v45 = vpop.f32.mrf.mxu0 }
 0x1bb   : > { %1219 = vmatpush.bf16.msra.mxu3 %v930_v52  ;;  %v3150_v52 = vor.u32 %v3697_v47, %v3147_v50 }
 0x1bf   : > { %1220 = vmatpush.bf16.msra.mxu3 %v929_v57 }
 0x1c0   : > { %v4302_v11 = vpop.f32.mrf.mxu1 }
 0x1c2   : > { %1201 = vmatmul.bf16.gmra.mxu2 %v3206_v61 }
 0x1c3   : > { %1221 = vmatpush.bf16.msra.mxu3 %v928_v0 }
 0x1c7   : > { %1222 = vmatpush.bf16.msra.mxu3 %v927_v15  ;;  %v3700_v15 = vld [vmem:[%s4076_s26 + $0x4c] sm:$0xf] }
 0x1c8   : > { %v902_v12 = vpop.f32.mrf.mxu1  ;;  %v3162_v56 = vor.u32 %v3700_v15, %v3159_v17 }
 0x1cb   : > { %1223 = vmatpush.bf16.msra.mxu3 %v926_v16  ;;  %v933_v16 = vpack.c.bf16 %v4302_v11, %v4296_v54 }
 0x1cd   : > { %v4350_v59 = vpop.f32.mrf.mxu0 }
 0x1cf   : > { %1224 = vmatpush.bf16.msra.mxu3 %v925_v20 }
 0x1d0   : > { %v904_v25 = vpop.f32.mrf.mxu1 }
 0x1d1   : > { %v934_v13 = vpack.c.bf16 %v904_v25, %v902_v12  ;;  %v3703_v12 = vld [vmem:[%s4076_s26 + $0x64] sm:$0xf] }
 0x1d2   : > { %1206 = vmatmul.bf16.gmra.mxu2 %v3218_v53  ;;  %1225 = vmatmul.bf16.vlgmr.msra.gmra.mxu3 %v3126_v23  ;;  %v3141_v53 = vld [vmem:[%s4076_s26 + $0x20] sm:$0xf]  ;;  %v3696_v23 = vld [vmem:[%s4076_s26 + $0x28] sm:$0xf0]  ;;  %v3174_v27 = vor.u32 %v3703_v12, %v3171_v49  ;;  %v3705_v12 = vld [vmem:[%s4076_s26 + $0x70] sm:$0xf0] }
 0x1d5   : > { %v4328_v41 = vpop.f32.mrf.mxu2  ;;  %v4360_v20 = vpop.f32.mrf.mxu0 }
 0x1d8   : > { %v907_v28 = vpop.f32.mrf.mxu1 }
 0x1dd   : > { %v4336_v36 = vpop.f32.mrf.mxu2  ;;  %v4369_v11 = vpop.f32.mrf.mxu0 }
 0x1e0   : > { %v909_v42 = vpop.f32.mrf.mxu1 }
 0x1e1   : > { %v935_v61 = vpack.c.bf16 %v909_v42, %v907_v28  ;;  %v3142_v28 = vor.u32 %v3696_v23, %v3141_v53 }
 0x1e2   : > { %1211 = vmatmul.bf16.gmra.mxu2 %v3230_v37  ;;  %1230 = vmatmul.bf16.gmra.mxu3 %v3138_v38  ;;  %v3153_v37 = vld [vmem:[%s4076_s26 + $0x38] sm:$0xf]  ;;  %v3699_v38 = vld [vmem:[%s4076_s26 + $0x40] sm:$0xf0] }
 0x1e3   : > { %v3154_v47 = vor.u32 %v3699_v38, %v3153_v37  ;;  %v3708_v37 = vld [vmem:[%s4076_s26 + $0x88] sm:$0xf0] }
 0x1e5   : > { %v4340_v43 = vpop.f32.mrf.mxu2  ;;  %v4377_v30 = vpop.f32.mrf.mxu0 }
 0x1e6   : > { %5313 = vst [vmem:[#allocation14_spill] sm:$0xff] %v4377_v30 }
 0x1e8   : > { %v912_v44 = vpop.f32.mrf.mxu1 }
 0x1ed   : > { %v4346_v51 = vpop.f32.mrf.mxu2  ;;  %v4385_v33 = vpop.f32.mrf.mxu0 }
 0x1f0   : > { %v914_v57 = vpop.f32.mrf.mxu1 }
 0x1f1   : > { %v936_v58 = vpack.c.bf16 %v914_v57, %v912_v44  ;;  %v3186_v44 = vor.u32 %v3706_v31, %v3183_v34  ;;  %v3195_v57 = vld [vmem:[%s4076_s26 + $0x9c] sm:$0xf0]  ;;  %v3219_v31 = vld [vmem:[%s4076_s26 + $0xcc] sm:$0xf0] }
 0x1f2   : > { %1235 = vmatmul.bf16.gmra.mxu3 %v3150_v52  ;;  %3261 = vmatmul.msk.bf16.vlgmr.msrb.gmra.mxu2 %vm502_vm0, %v4091_v2  ;;  %v3693_v2 = vld [vmem:[%s4076_s26 + $0x10] sm:$0xf0]  ;;  %v3189_v34 = vld [vmem:[%s4076_s26 + $0x80] sm:$0xf] }
 0x1f3   : > { %1280 = vmatpush.bf16.msrb.mxu0 %v936_v58  ;;  %v3130_v60 = vor.u32 %v3693_v2, %v3129_v19  ;;  %v3709_v52 = vld [vmem:[%s4076_s26 + $0x94] sm:$0xf]  ;;  %v3165_v58 = vld [vmem:[%s4076_s26 + $0x50] sm:$0xf]  ;;  %v3712_v2 = vld [vmem:[%s4076_s26 + $0xac] sm:$0xf] }
 0x1f4   : > { %v3198_v15 = vor.u32 %v3709_v52, %v3195_v57  ;;  %v3190_v52 = vor.u32 %v3708_v37, %v3189_v34  ;;  %v3213_v34 = vld [vmem:[%s4076_s26 + $0xb0] sm:$0xf]  ;;  %v3714_v37 = vld [vmem:[%s4076_s26 + $0xb8] sm:$0xf0] }
 0x1f5   : > { %v4352_v0 = vpop.f32.mrf.mxu2 }
 0x1f7   : > { %1281 = vmatpush.bf16.msrb.mxu0 %v935_v61  ;;  %v3702_v61 = vld [vmem:[%s4076_s26 + $0x58] sm:$0xf0] }
 0x1fb   : > { %1282 = vmatpush.bf16.msrb.mxu0 %v934_v13 }
 0x1fd   : > { %v4362_v21 = vpop.f32.mrf.mxu2 }
 0x1ff   : > { %1283 = vmatpush.bf16.msrb.mxu0 %v933_v16  ;;  %v3166_v16 = vor.u32 %v3702_v61, %v3165_v58  ;;  %v3718_v61 = vld [vmem:[%s4076_s26 + $0xdc] sm:$0xf] }
 0x202   : > { %1240 = vmatmul.bf16.gmra.mxu3 %v3162_v56  ;;  %3239 = vmatmul.msk.bf16.vlgmr.msrb.gmra.mxu0 %vm1127_vm1, %v3130_v60  ;;  %v3207_v56 = vld [vmem:[%s4076_s26 + $0xb4] sm:$0xf0]  ;;  %v3177_v60 = vld [vmem:[%s4076_s26 + $0x68] sm:$0xf] }
 0x203   : > { %3262 = vmatmul.msk.bf16.gmra.mxu2 %vm502_vm0, %v4098_v3  ;;  %v3210_v53 = vor.u32 %v3712_v2, %v3207_v56  ;;  %v3178_v23 = vor.u32 %v3705_v12, %v3177_v60  ;;  %v3711_v2 = vld [vmem:[%s4076_s26 + $0xa0] sm:$0xf0] }
 0x205   : > { %v4367_v54 = vpop.f32.mrf.mxu2 }
 0x20d   : > { %v4375_v25 = vpop.f32.mrf.mxu2 }
 0x212   : > { %1245 = vmatmul.bf16.gmra.mxu3 %v3174_v27  ;;  %3240 = vmatmul.msk.bf16.gmra.mxu0 %vm1127_vm1, %v3142_v28  ;;  %v3715_v28 = vld [vmem:[%s4076_s26 + $0xc4] sm:$0xf] }
 0x213   : > { %3263 = vmatmul.msk.bf16.gmra.mxu2 %vm502_vm0, %v4105_v4  ;;  %v4395_v4 = vpop.f32.mrf.mxu0 }
 0x214   : > { %5315 = vst [vmem:[#allocation16_spill] sm:$0xff] %v4395_v4 }
 0x215   : > { %v4382_v3 = vpop.f32.mrf.mxu2 }
 0x21b   : > { %v4405_v17 = vpop.f32.mrf.mxu0 }
 0x21d   : > { %v4390_v42 = vpop.f32.mrf.mxu2 }
 0x21e   : > { %5314 = vst [vmem:[#allocation15_spill] sm:$0xff] %v4390_v42 }
 0x222   : > { %1250 = vmatmul.bf16.gmra.mxu3 %v3186_v44  ;;  %3241 = vmatmul.msk.bf16.gmra.mxu0 %vm1127_vm1, %v3154_v47  ;;  %v3222_v47 = vor.u32 %v3715_v28, %v3219_v31 }
 0x223   : > { %3264 = vmatmul.msk.bf16.gmra.mxu2 %vm502_vm0, %v4112_v5  ;;  %v4412_v19 = vpop.f32.mrf.mxu0 }
 0x224   : > { %5317 = vst [vmem:[#allocation18_spill] sm:$0xff] %v4412_v19 }
 0x225   : > { %v4397_v50 = vpop.f32.mrf.mxu2 }
 0x22b   : > { %v4421_v27 = vpop.f32.mrf.mxu0 }
 0x22d   : > { %v4403_v13 = vpop.f32.mrf.mxu2 }
 0x22e   : > { %5316 = vst [vmem:[#allocation17_spill] sm:$0xff] %v4403_v13 }
 0x232   : > { %1255 = vmatmul.bf16.gmra.mxu3 %v3198_v15  ;;  %3242 = vmatmul.msk.bf16.gmra.mxu0 %vm1127_vm1, %v3166_v16  ;;  %v3231_v15 = vld [vmem:[%s4076_s26 + $0xe4] sm:$0xf0]  ;;  %v3201_v16 = vld [vmem:[%s4076_s26 + $0x98] sm:$0xf] }
 0x233   : > { %3265 = vmatmul.msk.bf16.gmra.mxu2 %vm502_vm0, %v4119_v6  ;;  %v4431_v38 = vpop.f32.mrf.mxu0  ;;  %v3234_v60 = vor.u32 %v3718_v61, %v3231_v15  ;;  %v3202_v12 = vor.u32 %v3711_v2, %v3201_v16  ;;  %v4475_v16 = vld [vmem:[%s5299_s5] ss:$0 sm:$0xff]  ;;  %v3225_v2 = vld [vmem:[%s4076_s26 + $0xc8] sm:$0xf] }
 0x234   : > { %5319 = vst [vmem:[#allocation20_spill] sm:$0xff] %v4431_v38 }
 0x235   : > { %v4410_v5 = vpop.f32.mrf.mxu2 }
 0x23b   : > { %v4440_v57 = vpop.f32.mrf.mxu0 }
 0x23d   : > { %v4418_v49 = vpop.f32.mrf.mxu2 }
 0x23e   : > { %5318 = vst [vmem:[#allocation19_spill] sm:$0xff] %v4418_v49 }
 0x242   : > { %1260 = vmatmul.bf16.gmra.mxu3 %v3210_v53  ;;  %3243 = vmatmul.msk.bf16.gmra.mxu0 %vm1127_vm1, %v3178_v23 }
 0x243   : > { %3266 = vmatmul.msk.bf16.gmra.mxu2 %vm502_vm0, %v4126_v7  ;;  %v4448_v53 = vpop.f32.mrf.mxu0 }
 0x244   : > { %5322 = vst [vmem:[#allocation23_spill] sm:$0xff] %v4448_v53 }
 0x245   : > { %v4425_v6 = vpop.f32.mrf.mxu2 }
 0x24b   : > { %v4457_v28 = vpop.f32.mrf.mxu0 }
 0x24d   : > { %v4433_v44 = vpop.f32.mrf.mxu2 }
 0x24e   : > { %5320 = vst [vmem:[#allocation21_spill] sm:$0xff] %v4433_v44 }
 0x252   : > { %1265 = vmatmul.bf16.gmra.mxu3 %v3222_v47  ;;  %3244 = vmatmul.msk.bf16.gmra.mxu0 %vm1127_vm1, %v3190_v52  ;;  %v3214_v52 = vor.u32 %v3714_v37, %v3213_v34 }
 0x253   : > { %3267 = vmatmul.msk.bf16.gmra.mxu2 %vm502_vm0, %v4133_v8  ;;  %v4466_v61 = vpop.f32.mrf.mxu0 }
 0x254   : > { %5324 = vst [vmem:[#allocation25_spill] sm:$0xff] %v4466_v61 }
 0x255   : > { %v4438_v7 = vpop.f32.mrf.mxu2  ;;  %v1226_v58 = vpop.f32.mrf.mxu3 }
 0x256   : > { %v1227_v34 = vadd.f32 %v1226_v58, %v4328_v41  ;;  %v3237_v41 = vld [vmem:[%s4076_s26 + $0xe0] sm:$0xf]  ;;  %v3720_v58 = vld [vmem:[%s4076_s26 + $0xe8] sm:$0xf0] }
 0x25d   : > { %v4446_v56 = vpop.f32.mrf.mxu2  ;;  %v4450_v23 = vpop.f32.mrf.mxu3 }
 0x25e   : > { %5321 = vst [vmem:[#allocation22_spill] sm:$0xff] %v4446_v56 }
 0x262   : > { %1270 = vmatmul.bf16.gmra.mxu3 %v3234_v60  ;;  %3245 = vmatmul.msk.bf16.gmra.mxu0 %vm1127_vm1, %v3202_v12  ;;  %v3717_v60 = vld [vmem:[%s4076_s26 + $0xd0] sm:$0xf0] }
 0x263   : > { %3268 = vmatmul.msk.bf16.gmra.mxu2 %vm502_vm0, %v4140_v9  ;;  %v3226_v37 = vor.u32 %v3717_v60, %v3225_v2  ;;  %v548_v2 = vadd.f32 %v4475_v16, %v4324_v24  ;;  %v3238_v60 = vor.u32 %v3720_v58, %v3237_v41 }
 0x265   : > { %v4455_v8 = vpop.f32.mrf.mxu2  ;;  %v1231_v31 = vpop.f32.mrf.mxu3 }
 0x26d   : > { %v4461_v47 = vpop.f32.mrf.mxu2  ;;  %v4468_v15 = vpop.f32.mrf.mxu3 }
 0x26e   : > { %5323 = vst [vmem:[#allocation24_spill] sm:$0xff] %v4461_v47 }
 0x272   : > { %3246 = vmatmul.msk.bf16.gmra.mxu0 %vm1127_vm1, %v3214_v52 }
 0x273   : > { %3269 = vmatmul.msk.bf16.gmra.mxu2 %vm502_vm0, %v4147_v10  ;;  %v543_v10 = vadd.f32 %v4475_v16, %v4300_v1 }
 0x275   : > { %v4470_v9 = vpop.f32.mrf.mxu2  ;;  %v1236_v61 = vpop.f32.mrf.mxu3 }
 0x276   : > { %v1237_v41 = vadd.f32 %v1236_v61, %v4352_v0 }
 0x27d   : > { %v4479_v12 = vpop.f32.mrf.mxu2  ;;  %v4495_v1 = vpop.f32.mrf.mxu3 }
 0x27f   : > { %v1285_v47 = vpop.f32.mrf.mxu0 }
 0x280   : > { %v1286_v53 = vadd.f32 %v1285_v47, %v1227_v34  ;;  %v1232_v47 = vadd.f32 %v1231_v31, %v4340_v43  ;;  %v553_v31 = vadd.f32 %v4475_v16, %v4338_v39  ;;  %v558_v39 = vadd.f32 %v4475_v16, %v4350_v59 }
 0x282   : > { %v4486_v56 = vadd.f32 %v1286_v53, %v543_v10  ;;  %3247 = vmatmul.msk.bf16.gmra.mxu0 %vm1127_vm1, %v3226_v37 }
 0x283   : > { %3270 = vmatmul.msk.bf16.gmra.mxu2 %vm502_vm0, %v4160_v14 }
 0x285   : > { %v1241_v52 = vpop.f32.mrf.mxu3 }
 0x286   : > { %v4491_v38 = vpop.f32.mrf.mxu2  ;;  %v1242_v0 = vadd.f32 %v1241_v52, %v4367_v54  ;;  %v563_v54 = vadd.f32 %v4475_v16, %v4369_v11 }
 0x287   : > { %v4493_v44 = vpop.f32.mrf.mxu0 }
 0x28d   : > { %v4515_v43 = vpop.f32.mrf.mxu3 }
 0x28e   : > { %v4502_v53 = vpop.f32.mrf.mxu2 }
 0x28f   : > { %v1290_v10 = vpop.f32.mrf.mxu0 }
 0x290   : > { %v1291_v34 = vadd.f32 %v1290_v10, %v1232_v47 }
 0x292   : > { %v4506_v37 = vadd.f32 %v1291_v34, %v548_v2  ;;  %3248 = vmatmul.msk.bf16.gmra.mxu0 %vm1127_vm1, %v3238_v60 }
 0x293   : > { %3271 = vmatmul.msk.bf16.gmra.mxu2 %vm502_vm0, %v4167_v18 }
 0x295   : > { %v1246_v34 = vpop.f32.mrf.mxu3 }
 0x296   : > { %v4511_v19 = vpop.f32.mrf.mxu2  ;;  %v1247_v52 = vadd.f32 %v1246_v34, %v4382_v3 }
 0x297   : > { %v4513_v24 = vpop.f32.mrf.mxu0 }
 0x29e   : > { %v4520_v58 = vpop.f32.mrf.mxu2 }
 0x29f   : > { %v1295_v2 = vpop.f32.mrf.mxu0 }
 0x2a0   : > { %v1296_v60 = vadd.f32 %v1295_v2, %v1237_v41  ;;  %v4539_v2 = vpop.f32.mrf.mxu3 }
 0x2a1   : > { %5325 = vst [vmem:[#allocation26_spill] sm:$0xff] %v4539_v2 }
 0x2a2   : > { %v4524_v10 = vadd.f32 %v1296_v60, %v553_v31 }
 0x2a3   : > { %3272 = vmatmul.msk.bf16.gmra.mxu2 %vm502_vm0, %v4174_v22 }
 0x2a6   : > { %v4528_v18 = vpop.f32.mrf.mxu2 }
 0x2a7   : > { %v4530_v14 = vpop.f32.mrf.mxu0 }
 0x2a8   : > { %v1251_v59 = vpop.f32.mrf.mxu3 }
 0x2a9   : > { %v1252_v11 = vadd.f32 %v1251_v59, %v4397_v50 }
 0x2ae   : > { %v4535_v61 = vpop.f32.mrf.mxu2 }
 0x2af   : > { %v1300_v49 = vpop.f32.mrf.mxu0 }
 0x2b0   : > { %v1301_v41 = vadd.f32 %v1300_v49, %v1242_v0 }
 0x2b2   : > { %v4541_v22 = vadd.f32 %v1301_v41, %v558_v39  ;;  %v4554_v39 = vpop.f32.mrf.mxu3  ;;  %v568_v41 = vadd.f32 %v4475_v16, %v4385_v33 }
 0x2b3   : > { %3273 = vmatmul.msk.bf16.gmra.mxu2 %vm502_vm0, %v4181_v26  ;;  %5326 = vst [vmem:[#allocation27_spill] sm:$0xff] %v4554_v39 }
 0x2b6   : > { %v1401_v60 = vpop.f32.mrf.mxu2 }
 0x2b7   : > { %v4545_v47 = vpop.f32.mrf.mxu0 }
 0x2ba   : > { %v1256_v3 = vpop.f32.mrf.mxu3 }
 0x2bb   : > { %v1257_v33 = vadd.f32 %v1256_v3, %v4410_v5 }
 0x2be   : > { %v1403_v4 = vpop.f32.mrf.mxu2 }
 0x2bf   : > { %v1305_v13 = vpop.f32.mrf.mxu0 }
 0x2c0   : > { %v1306_v31 = vadd.f32 %v1305_v13, %v1247_v52  ;;  %v573_v52 = vadd.f32 %v4475_v16, %v4405_v17 }
 0x2c2   : > { %v4550_v49 = vadd.f32 %v1306_v31, %v563_v54  ;;  %v4567_v54 = vpop.f32.mrf.mxu3 }
 0x2c3   : > { %3274 = vmatmul.msk.bf16.gmra.mxu2 %vm502_vm0, %v4188_v29  ;;  %5329 = vst [vmem:[#allocation30_spill] sm:$0xff] %v4567_v54 }
 0x2c6   : > { %v1406_v26 = vpop.f32.mrf.mxu2 }
 0x2c7   : > { %v4556_v0 = vpop.f32.mrf.mxu0 }
 0x2c8   : > { %5327 = vst [vmem:[#allocation28_spill] sm:$0xff] %v4556_v0 }
 0x2ce   : > { %v1408_v30 = vpop.f32.mrf.mxu2 }
 0x2cf   : > { %v1310_v34 = vpop.f32.mrf.mxu0 }
 0x2d0   : > { %v1311_v2 = vadd.f32 %v1310_v34, %v1252_v11  ;;  %v578_v34 = vadd.f32 %v4475_v16, %v4421_v27  ;;  %v1486_v27 = vpack.c.bf16 %v1408_v30, %v1406_v26 }
 0x2d2   : > { %v4561_v13 = vadd.f32 %v1311_v2, %v568_v41  ;;  %v1261_v2 = vpop.f32.mrf.mxu3 }
 0x2d3   : > { %3275 = vmatmul.msk.bf16.gmra.mxu2 %vm502_vm0, %v4195_v32  ;;  %v1262_v17 = vadd.f32 %v1261_v2, %v4425_v6  ;;  %v1485_v6 = vpack.c.bf16 %v1403_v4, %v1401_v60  ;;  %v5335_v4 = vpack.c.bf16 %v4520_v58, %v4511_v19  ;;  %v5337_v60 = vpack.c.bf16 %v4502_v53, %v4491_v38 }
 0x2d4   : > { %v588_v19 = vadd.f32 %v4475_v16, %v4457_v28 }
 0x2d6   : > { %v1411_v29 = vpop.f32.mrf.mxu2 }
 0x2d7   : > { %v4565_v31 = vpop.f32.mrf.mxu0 }
 0x2d8   : > { %5328 = vst [vmem:[#allocation29_spill] sm:$0xff] %v4565_v31 }
 0x2da   : > { %v4578_v11 = vpop.f32.mrf.mxu3 }
 0x2db   : > { %5331 = vst [vmem:[#allocation32_spill] sm:$0xff] %v4578_v11 }
 0x2de   : > { %v1413_v50 = vpop.f32.mrf.mxu2 }
 0x2df   : > { %v1315_v59 = vpop.f32.mrf.mxu0 }
 0x2e0   : > { %v1316_v39 = vadd.f32 %v1315_v59, %v1257_v33 }
 0x2e2   : > { %v4572_v0 = vadd.f32 %v1316_v39, %v573_v52  ;;  %v1266_v59 = vpop.f32.mrf.mxu3 }
 0x2e3   : > { %3276 = vmatmul.msk.bf16.gmra.mxu2 %vm502_vm0, %v4202_v35  ;;  %v1487_v35 = vpack.c.bf16 %v1413_v50, %v1411_v29  ;;  %v1267_v2 = vadd.f32 %v1266_v59, %v4438_v7  ;;  %v3730_v59 = vld [vmem:[%s4076_s26 + $0x128] sm:$0xf0] }
 0x2e6   : > { %v1416_v32 = vpop.f32.mrf.mxu2 }
 0x2e7   : > { %v4576_v41 = vpop.f32.mrf.mxu0 }
 0x2e8   : > { %5330 = vst [vmem:[#allocation31_spill] sm:$0xff] %v4576_v41  ;;  %v3858_v41 = vld [vmem:[%s5295_s1 + $0x50] sm:$0xff] }
 0x2ea   : > { %v4596_v50 = vpop.f32.mrf.mxu3 }
 0x2eb   : > { %5333 = vst [vmem:[#allocation34_spill] sm:$0xff] %v4596_v50 }
 0x2ee   : > { %v1418_v5 = vpop.f32.mrf.mxu2 }
 0x2ef   : > { %v1320_v3 = vpop.f32.mrf.mxu0  ;;  %v1488_v54 = vpack.c.bf16 %v1418_v5, %v1416_v32 }
 0x2f0   : > { %v1321_v33 = vadd.f32 %v1320_v3, %v1262_v17 }
 0x2f1   : > { %1722 = vmatpush.bf16.msrb.mxu3 %v1488_v54  ;;  %v583_v54 = vadd.f32 %v4475_v16, %v4440_v57 }
 0x2f2   : > { %v4583_v39 = vadd.f32 %v1321_v33, %v578_v34  ;;  %v5334_v34 = vpack.c.bf16 %v4535_v61, %v4528_v18  ;;  %v3323_v18 = vld [vmem:[%s4076_s26 + $0xf0] sm:$0xf]  ;;  %v3724_v61 = vld [vmem:[%s4076_s26 + $0xf8] sm:$0xf0]  ;;  %v1271_v26 = vpop.f32.mrf.mxu3  ;;  %v3727_v33 = vld [vmem:[%s4076_s26 + $0x110] sm:$0xf0] }
 0x2f3   : > { %3277 = vmatmul.msk.bf16.gmra.mxu2 %vm502_vm0, %v4212_v40  ;;  %v3324_v17 = vor.u32 %v3724_v61, %v3323_v18  ;;  %v1272_v58 = vadd.f32 %v1271_v26, %v4455_v8  ;;  %v3383_v26 = vld [vmem:[%s4076_s26 + $0x168] sm:$0xf] }
 0x2f5   : > { %1723 = vmatpush.bf16.msrb.mxu3 %v1487_v35  ;;  %v3347_v35 = vld [vmem:[%s4076_s26 + $0x120] sm:$0xf] }
 0x2f6   : > { %v4587_v52 = vpop.f32.mrf.mxu2 }
 0x2f7   : > { %v4589_v11 = vpop.f32.mrf.mxu0 }
 0x2f8   : > { %5332 = vst [vmem:[#allocation33_spill] sm:$0xff] %v4589_v11 }
 0x2f9   : > { %1724 = vmatpush.bf16.msrb.mxu3 %v1486_v27  ;;  %v3348_v27 = vor.u32 %v3730_v59, %v3347_v35 }
 0x2fd   : > { %1725 = vmatpush.bf16.msrb.mxu3 %v1485_v6 }
 0x2fe   : > { %v4594_v32 = vpop.f32.mrf.mxu2 }
 0x2ff   : > { %v1325_v40 = vpop.f32.mrf.mxu0 }
 0x300   : > { %v1326_v29 = vadd.f32 %v1325_v40, %v1267_v2  ;;  %v3733_v2 = vld [vmem:[%s4076_s26 + $0x140] sm:$0xf0] }
 0x301   : > { %1726 = vmatpush.bf16.msrb.mxu3 %v5334_v34 }
 0x302   : > { %v4601_v30 = vadd.f32 %v1326_v29, %v583_v54  ;;  %v3359_v54 = vld [vmem:[%s4076_s26 + $0x138] sm:$0xf] }
 0x303   : > { %3278 = vmatmul.msk.bf16.gmra.mxu2 %vm502_vm0, %v4239_v48  ;;  %v5338_v48 = vpack.c.bf16 %v4479_v12, %v4470_v9  ;;  %v3335_v12 = vld [vmem:[%s4076_s26 + $0x108] sm:$0xf]  ;;  %v3360_v40 = vor.u32 %v3733_v2, %v3359_v54  ;;  %v3407_v2 = vld [vmem:[%s4076_s26 + $0x198] sm:$0xf] }
 0x304   : > { %v3336_v28 = vor.u32 %v3727_v33, %v3335_v12 }
 0x305   : > { %1727 = vmatpush.bf16.msrb.mxu3 %v5335_v4  ;;  %v3371_v4 = vld [vmem:[%s4076_s26 + $0x150] sm:$0xf] }
 0x306   : > { %v4608_v7 = vpop.f32.mrf.mxu2 }
 0x307   : > { %v4610_v57 = vpop.f32.mrf.mxu0 }
 0x308   : > { %5336 = vst [vmem:[#allocation35_spill] sm:$0xff] %v4610_v57 }
 0x309   : > { %1728 = vmatpush.bf16.msrb.mxu3 %v5337_v60  ;;  %v3736_v60 = vld [vmem:[%s4076_s26 + $0x158] sm:$0xf0] }
 0x30d   : > { %1729 = vmatpush.bf16.msrb.mxu3 %v5338_v48 }
 0x30e   : > { %v4623_v5 = vpop.f32.mrf.mxu2 }
 0x30f   : > { %v1330_v38 = vpop.f32.mrf.mxu0 }
 0x310   : > { %v1331_v53 = vadd.f32 %v1330_v38, %v1272_v58  ;;  %1730 = vmatmul.bf16.vlgmr.msrb.gmra.mxu3 %v3324_v17  ;;  %v3739_v17 = vld [vmem:[%s4076_s26 + $0x170] sm:$0xf0]  ;;  %v3395_v38 = vld [vmem:[%s4076_s26 + $0x180] sm:$0xf] }
 0x311   : > { %v3384_v48 = vor.u32 %v3739_v17, %v3383_v26 }
 0x312   : > { %v4625_v3 = vadd.f32 %v1331_v53, %v588_v19  ;;  %v3742_v53 = vld [vmem:[%s4076_s26 + $0x188] sm:$0xf0] }
 0x313   : > { %3279 = vmatmul.msk.bf16.gmra.mxu2 %vm502_vm0, %v4257_v55  ;;  %v3396_v12 = vor.u32 %v3742_v53, %v3395_v38  ;;  %v3726_v38 = vld [vmem:[%s4076_s26 + $0x10c] sm:$0xf]  ;;  %v3337_v53 = vld [vmem:[%s4076_s26 + $0x114] sm:$0xf0] }
 0x316   : > { %v1431_v9 = vpop.f32.mrf.mxu2 }
 0x31e   : > { %v1433_v16 = vpop.f32.mrf.mxu2 }
 0x31f   : > { %v1491_v26 = vpack.c.bf16 %v1433_v16, %v1431_v9  ;;  %v3723_v9 = vld [vmem:[%s4076_s26 + $0xf4] sm:$0xf]  ;;  %v3325_v16 = vld [vmem:[%s4076_s26 + $0xfc] sm:$0xf0] }
 0x320   : > { %1735 = vmatmul.bf16.gmra.mxu3 %v3336_v28  ;;  %v3328_v17 = vor.u32 %v3723_v9, %v3325_v16  ;;  %v3732_v9 = vld [vmem:[%s4076_s26 + $0x13c] sm:$0xf] }
 0x323   : > { %3280 = vmatmul.msk.bf16.gmra.mxu2 %vm502_vm0, %v4272_v62  ;;  %v3372_v62 = vor.u32 %v3736_v60, %v3371_v4 }
 0x326   : > { %v1436_v8 = vpop.f32.mrf.mxu2 }
 0x32e   : > { %v1438_v6 = vpop.f32.mrf.mxu2 }
 0x32f   : > { %v1492_v60 = vpack.c.bf16 %v1438_v6, %v1436_v8  ;;  %v1489_v8 = vpack.c.bf16 %v4594_v32, %v4587_v52  ;;  %v3748_v6 = vld [vmem:[%s4076_s26 + $0x1b8] sm:$0xf0] }
 0x330   : > { %1740 = vmatmul.bf16.gmra.mxu3 %v3348_v27 }
 0x336   : > { %v1441_v55 = vpop.f32.mrf.mxu2 }
 0x33e   : > { %v1443_v29 = vpop.f32.mrf.mxu2 }
 0x33f   : > { %v1493_v54 = vpack.c.bf16 %v1443_v29, %v1441_v55  ;;  %v3754_v55 = vld [vmem:[%s5297_s3 + $0x28] sm:$0xff]  ;;  %v3419_v29 = vld [vmem:[%s4076_s26 + $0x1b0] sm:$0xf] }
 0x340   : > { %1745 = vmatmul.bf16.gmra.mxu3 %v3360_v40  ;;  %v3745_v40 = vld [vmem:[%s4076_s26 + $0x1a0] sm:$0xf0] }
 0x341   : > { %v3408_v4 = vor.u32 %v3745_v40, %v3407_v2  ;;  %1942 = vmatpush.bf16.msra.mxu3 %v3754_v55  ;;  %v3729_v2 = vld [vmem:[%s4076_s26 + $0x124] sm:$0xf]  ;;  %v3349_v40 = vld [vmem:[%s4076_s26 + $0x12c] sm:$0xf0] }
 0x342   : > { %v3848_v55 = vld [vmem:[%s5295_s1] sm:$0xff] }
 0x346   : > { %v1446_v34 = vpop.f32.mrf.mxu2 }
 0x34e   : > { %v1448_v18 = vpop.f32.mrf.mxu2 }
 0x34f   : > { %v1494_v59 = vpack.c.bf16 %v1448_v18, %v1446_v34  ;;  %v1490_v34 = vpack.c.bf16 %v4623_v5, %v4608_v7  ;;  %v4658_v7 = vpop.f32.mrf.mxu3  ;;  %v3753_v5 = vld [vmem:[%s5297_s3 + $0x20] sm:$0xff] }
 0x350   : > { %1750 = vmatmul.bf16.gmra.mxu3 %v3372_v62  ;;  %5339 = vst [vmem:[#allocation36_spill] sm:$0xff] %v4658_v7 }
 0x351   : > { %1943 = vmatpush.bf16.msra.mxu3 %v3753_v5  ;;  %v3361_v5 = vld [vmem:[%s4076_s26 + $0x144] sm:$0xf0] }
 0x356   : > { %v1451_v61 = vpop.f32.mrf.mxu2 }
 0x35e   : > { %v1453_v19 = vpop.f32.mrf.mxu2 }
 0x35f   : > { %v1495_v35 = vpack.c.bf16 %v1453_v19, %v1451_v61  ;;  %v3420_v61 = vor.u32 %v3748_v6, %v3419_v29  ;;  %v3431_v19 = vld [vmem:[%s4076_s26 + $0x1c8] sm:$0xf] }
 0x360   : > { %1755 = vmatmul.bf16.gmra.mxu3 %v3384_v48 }
 0x366   : > { %v1456_v58 = vpop.f32.mrf.mxu2 }
 0x36e   : > { %v1458_v33 = vpop.f32.mrf.mxu2 }
 0x36f   : > { %v1496_v28 = vpack.c.bf16 %v1458_v33, %v1456_v58  ;;  %v3751_v58 = vld [vmem:[%s4076_s26 + $0x1d0] sm:$0xf0] }
 0x370   : > { %1760 = vmatmul.bf16.gmra.mxu3 %v3396_v12  ;;  %v3432_v33 = vor.u32 %v3751_v58, %v3431_v19  ;;  %v3364_v58 = vor.u32 %v3732_v9, %v3361_v5  ;;  %v3851_v9 = vld [vmem:[%s5295_s1 + $0x18] sm:$0xff]  ;;  %v3741_v5 = vld [vmem:[%s4076_s26 + $0x184] sm:$0xf] }
 0x371   : > { %1781 = vmatpush.bf16.msra.mxu0 %v1496_v28  ;;  %v3340_v28 = vor.u32 %v3726_v38, %v3337_v53  ;;  %v3343_v38 = vld [vmem:[%s4076_s26 + $0x110] sm:$0xf]  ;;  %v3728_v53 = vld [vmem:[%s4076_s26 + $0x118] sm:$0xf0] }
 0x375   : > { %1782 = vmatpush.bf16.msra.mxu0 %v1495_v35 }
 0x376   : > { %v4643_v27 = vpop.f32.mrf.mxu2 }
 0x379   : > { %1783 = vmatpush.bf16.msra.mxu0 %v1494_v59 }
 0x37d   : > { %1784 = vmatpush.bf16.msra.mxu0 %v1493_v54 }
 0x37e   : > { %v1463_v62 = vpop.f32.mrf.mxu2 }
 0x37f   : > { %v1497_v16 = vpack.c.bf16 %v1463_v62, %v4643_v27  ;;  %v3735_v62 = vld [vmem:[%s4076_s26 + $0x154] sm:$0xf] }
 0x380   : > { %1765 = vmatmul.bf16.gmra.mxu3 %v3408_v4 }
 0x381   : > { %1785 = vmatpush.bf16.msra.mxu0 %v1492_v60  ;;  %v3352_v60 = vor.u32 %v3729_v2, %v3349_v40  ;;  %v3738_v40 = vld [vmem:[%s4076_s26 + $0x16c] sm:$0xf] }
 0x385   : > { %1786 = vmatpush.bf16.msra.mxu0 %v1491_v26 }
 0x386   : > { %v1466_v18 = vpop.f32.mrf.mxu2 }
 0x389   : > { %1787 = vmatpush.bf16.msra.mxu0 %v1490_v34 }
 0x38d   : > { %1788 = vmatpush.bf16.msra.mxu0 %v1489_v8 }
 0x38e   : > { %v1468_v48 = vpop.f32.mrf.mxu2 }
 0x38f   : > { %v1498_v6 = vpack.c.bf16 %v1468_v48, %v1466_v18  ;;  %v3849_v18 = vld [vmem:[%s5295_s1 + $0x8] sm:$0xff]  ;;  %v3373_v48 = vld [vmem:[%s4076_s26 + $0x15c] sm:$0xf0] }
 0x390   : > { %1770 = vmatmul.bf16.gmra.mxu3 %v3420_v61  ;;  %1789 = vmatmul.bf16.vlgmr.msra.gmra.mxu0 %v3328_v17  ;;  %v3331_v61 = vld [vmem:[%s4076_s26 + $0xf8] sm:$0xf]  ;;  %v3725_v17 = vld [vmem:[%s4076_s26 + $0x100] sm:$0xf0] }
 0x393   : > { %v4663_v52 = vpop.f32.mrf.mxu3 }
 0x396   : > { %v1471_v32 = vpop.f32.mrf.mxu2 }
 0x39b   : > { %v4669_v12 = vpop.f32.mrf.mxu3 }
 0x39e   : > { %v1473_v35 = vpop.f32.mrf.mxu2 }
 0x39f   : > { %v1499_v29 = vpack.c.bf16 %v1473_v35, %v1471_v32  ;;  %v3332_v32 = vor.u32 %v3725_v17, %v3331_v61  ;;  %v3344_v35 = vor.u32 %v3728_v53, %v3343_v38  ;;  %v3397_v61 = vld [vmem:[%s4076_s26 + $0x18c] sm:$0xf0]  ;;  %v3367_v17 = vld [vmem:[%s4076_s26 + $0x140] sm:$0xf]  ;;  %v3744_v53 = vld [vmem:[%s4076_s26 + $0x19c] sm:$0xf] }
 0x3a0   : > { %1775 = vmatmul.bf16.gmra.mxu3 %v3432_v33  ;;  %1794 = vmatmul.bf16.gmra.mxu0 %v3340_v28  ;;  %v3376_v28 = vor.u32 %v3735_v62, %v3373_v48  ;;  %v3852_v48 = vld [vmem:[%s5295_s1 + $0x20] sm:$0xff] }
 0x3a3   : > { %v4671_v59 = vpop.f32.mrf.mxu3 }
 0x3a6   : > { %v1476_v54 = vpop.f32.mrf.mxu2 }
 0x3ab   : > { %v4675_v4 = vpop.f32.mrf.mxu3 }
 0x3ae   : > { %v1478_v26 = vpop.f32.mrf.mxu2 }
 0x3af   : > { %v1500_v34 = vpack.c.bf16 %v1478_v26, %v1476_v54  ;;  %v3850_v54 = vld [vmem:[%s5295_s1 + $0x10] sm:$0xff]  ;;  %v3355_v26 = vld [vmem:[%s4076_s26 + $0x128] sm:$0xf] }
 0x3b0   : > { %1799 = vmatmul.bf16.gmra.mxu0 %v3352_v60  ;;  %3463 = vmatmul.msk.bf16.vlgmr.msra.gmra.mxu3 %vm502_vm0, %v3848_v55  ;;  %v3385_v60 = vld [vmem:[%s4076_s26 + $0x174] sm:$0xf0] }
 0x3b1   : > { %1844 = vmatpush.bf16.msrb.mxu1 %v1500_v34  ;;  %v3731_v34 = vld [vmem:[%s4076_s26 + $0x130] sm:$0xf0] }
 0x3b3   : > { %v4681_v8 = vpop.f32.mrf.mxu3 }
 0x3b5   : > { %1845 = vmatpush.bf16.msrb.mxu1 %v1499_v29  ;;  %v3388_v29 = vor.u32 %v3738_v40, %v3385_v60 }
 0x3b9   : > { %1846 = vmatpush.bf16.msrb.mxu1 %v1498_v6  ;;  %v3356_v6 = vor.u32 %v3731_v34, %v3355_v26  ;;  %v3853_v34 = vld [vmem:[%s5295_s1 + $0x28] sm:$0xff] }
 0x3bb   : > { %v4688_v19 = vpop.f32.mrf.mxu3 }
 0x3bd   : > { %1847 = vmatpush.bf16.msrb.mxu1 %v1497_v16 }
 0x3c0   : > { %1804 = vmatmul.bf16.gmra.mxu0 %v3364_v58  ;;  %3441 = vmatmul.msk.bf16.vlgmr.msrb.gmra.mxu1 %vm1127_vm1, %v3332_v32  ;;  %v3734_v58 = vld [vmem:[%s4076_s26 + $0x148] sm:$0xf0] }
 0x3c1   : > { %3464 = vmatmul.msk.bf16.gmra.mxu3 %vm502_vm0, %v3849_v18  ;;  %v3400_v18 = vor.u32 %v3741_v5, %v3397_v61  ;;  %v3368_v62 = vor.u32 %v3734_v58, %v3367_v17  ;;  %v3391_v5 = vld [vmem:[%s4076_s26 + $0x170] sm:$0xf]  ;;  %v3740_v61 = vld [vmem:[%s4076_s26 + $0x178] sm:$0xf0] }
 0x3c3   : > { %v4695_v27 = vpop.f32.mrf.mxu3 }
 0x3cb   : > { %v4701_v33 = vpop.f32.mrf.mxu3 }
 0x3d0   : > { %1809 = vmatmul.bf16.gmra.mxu0 %v3376_v28  ;;  %3442 = vmatmul.msk.bf16.gmra.mxu1 %vm1127_vm1, %v3344_v35  ;;  %v3409_v28 = vld [vmem:[%s4076_s26 + $0x1a4] sm:$0xf0]  ;;  %v3379_v35 = vld [vmem:[%s4076_s26 + $0x158] sm:$0xf] }
 0x3d1   : > { %3465 = vmatmul.msk.bf16.gmra.mxu3 %vm502_vm0, %v3850_v54  ;;  %v3737_v54 = vld [vmem:[%s4076_s26 + $0x160] sm:$0xf0]  ;;  %v3412_v60 = vor.u32 %v3744_v53, %v3409_v28 }
 0x3d2   : > { %v3380_v26 = vor.u32 %v3737_v54, %v3379_v35  ;;  %v3750_v35 = vld [vmem:[%s4076_s26 + $0x1cc] sm:$0xf]  ;;  %v3433_v54 = vld [vmem:[%s4076_s26 + $0x1d4] sm:$0xf0] }
 0x3d3   : > { %v4708_v2 = vpop.f32.mrf.mxu3 }
 0x3db   : > { %v4714_v55 = vpop.f32.mrf.mxu3 }
 0x3dc   : > { %5340 = vst [vmem:[#allocation37_spill] sm:$0xff] %v4714_v55 }
 0x3e0   : > { %1814 = vmatmul.bf16.gmra.mxu0 %v3388_v29  ;;  %3443 = vmatmul.msk.bf16.gmra.mxu1 %vm1127_vm1, %v3356_v6  ;;  %v3747_v6 = vld [vmem:[%s4076_s26 + $0x1b4] sm:$0xf] }
 0x3e1   : > { %3466 = vmatmul.msk.bf16.gmra.mxu3 %vm502_vm0, %v3851_v9  ;;  %v3421_v9 = vld [vmem:[%s4076_s26 + $0x1bc] sm:$0xf0] }
 0x3e2   : > { %v3424_v58 = vor.u32 %v3747_v6, %v3421_v9  ;;  %v3436_v6 = vor.u32 %v3750_v35, %v3433_v54 }
 0x3e3   : > { %v4721_v16 = vpop.f32.mrf.mxu3 }
 0x3eb   : > { %v4727_v32 = vpop.f32.mrf.mxu3 }
 0x3ec   : > { %5341 = vst [vmem:[#allocation38_spill] sm:$0xff] %v4727_v32 }
 0x3f0   : > { %1819 = vmatmul.bf16.gmra.mxu0 %v3400_v18  ;;  %3444 = vmatmul.msk.bf16.gmra.mxu1 %vm1127_vm1, %v3368_v62  ;;  %v3392_v18 = vor.u32 %v3740_v61, %v3391_v5  ;;  %v4755_v62 = vpop.f32.mrf.mxu0  ;;  %v3855_v61 = vld [vmem:[%s5295_s1 + $0x38] sm:$0xff] }
 0x3f1   : > { %3467 = vmatmul.msk.bf16.gmra.mxu3 %vm502_vm0, %v3852_v48  ;;  %5344 = vst [vmem:[#allocation41_spill] sm:$0xff] %v4755_v62  ;;  %v3854_v48 = vld [vmem:[%s5295_s1 + $0x30] sm:$0xff]  ;;  %v3746_v62 = vld [vmem:[%s4076_s26 + $0x1a8] sm:$0xf0] }
 0x3f3   : > { %v4734_v38 = vpop.f32.mrf.mxu3 }
 0x3fb   : > { %v4740_v40 = vpop.f32.mrf.mxu3 }
 0x3fc   : > { %5342 = vst [vmem:[#allocation39_spill] sm:$0xff] %v4740_v40 }
 0x400   : > { %1824 = vmatmul.bf16.gmra.mxu0 %v3412_v60  ;;  %3445 = vmatmul.msk.bf16.gmra.mxu1 %vm1127_vm1, %v3380_v26  ;;  %v3403_v60 = vld [vmem:[%s4076_s26 + $0x188] sm:$0xf]  ;;  %v3743_v26 = vld [vmem:[%s4076_s26 + $0x190] sm:$0xf0] }
 0x401   : > { %3468 = vmatmul.msk.bf16.gmra.mxu3 %vm502_vm0, %v3853_v34  ;;  %v3404_v9 = vor.u32 %v3743_v26, %v3403_v60  ;;  %v3856_v60 = vld [vmem:[%s5295_s1 + $0x40] sm:$0xff] }
 0x403   : > { %v4747_v29 = vpop.f32.mrf.mxu3 }
 0x40b   : > { %v4753_v17 = vpop.f32.mrf.mxu3 }
 0x40c   : > { %5343 = vst [vmem:[#allocation40_spill] sm:$0xff] %v4753_v17  ;;  %v3857_v17 = vld [vmem:[%s5295_s1 + $0x48] sm:$0xff] }
 0x40d   : > { %v1790_v28 = vpop.f32.mrf.mxu0 }
 0x410   : > { %1829 = vmatmul.bf16.gmra.mxu0 %v3424_v58  ;;  %3446 = vmatmul.msk.bf16.gmra.mxu1 %vm1127_vm1, %v3392_v18 }
 0x411   : > { %3469 = vmatmul.msk.bf16.gmra.mxu3 %vm502_vm0, %v3854_v48  ;;  %v3415_v48 = vld [vmem:[%s4076_s26 + $0x1a0] sm:$0xf] }
 0x412   : > { %v3416_v54 = vor.u32 %v3746_v62, %v3415_v48  ;;  %v1791_v62 = vadd.f32 %v1790_v28, %v4663_v52 }
 0x413   : > { %v4762_v53 = vpop.f32.mrf.mxu3 }
 0x415   : > { %v4770_v5 = vpop.f32.mrf.mxu0 }
 0x41b   : > { %v4768_v34 = vpop.f32.mrf.mxu3 }
 0x41d   : > { %v1795_v18 = vpop.f32.mrf.mxu0 }
 0x420   : > { %1834 = vmatmul.bf16.gmra.mxu0 %v3436_v6  ;;  %3447 = vmatmul.msk.bf16.gmra.mxu1 %vm1127_vm1, %v3404_v9  ;;  %v3427_v9 = vld [vmem:[%s4076_s26 + $0x1b8] sm:$0xf] }
 0x421   : > { %3470 = vmatmul.msk.bf16.gmra.mxu3 %vm502_vm0, %v3855_v61  ;;  %v3749_v61 = vld [vmem:[%s4076_s26 + $0x1c0] sm:$0xf0] }
 0x423   : > { %v4777_v58 = vpop.f32.mrf.mxu3 }
 0x425   : > { %v4788_v26 = vpop.f32.mrf.mxu0 }
 0x42b   : > { %v4781_v35 = vpop.f32.mrf.mxu3 }
 0x42c   : > { %5345 = vst [vmem:[#allocation42_spill] sm:$0xff] %v4781_v35 }
 0x42d   : > { %v1800_v35 = vpop.f32.mrf.mxu0 }
 0x430   : > { %3448 = vmatmul.msk.bf16.gmra.mxu1 %vm1127_vm1, %v3416_v54  ;;  %v3428_v54 = vor.u32 %v3749_v61, %v3427_v9  ;;  %v3439_v9 = vld [vmem:[%s4076_s26 + $0x1d0] sm:$0xf]  ;;  %v3752_v61 = vld [vmem:[%s4076_s26 + $0x1d8] sm:$0xf0] }
 0x431   : > { %3471 = vmatmul.msk.bf16.gmra.mxu3 %vm502_vm0, %v3856_v60 }
 0x433   : > { %v4790_v6 = vpop.f32.mrf.mxu3 }
 0x435   : > { %v4811_v28 = vpop.f32.mrf.mxu0 }
 0x43b   : > { %v4794_v7 = vpop.f32.mrf.mxu3 }
 0x43d   : > { %v1849_v57 = vpop.f32.mrf.mxu1  ;;  %v1805_v40 = vpop.f32.mrf.mxu0 }
 0x43e   : > { %v1850_v50 = vadd.f32 %v1849_v57, %v1791_v62  ;;  %v1796_v57 = vadd.f32 %v1795_v18, %v4671_v59 }
 0x440   : > { %v4800_v60 = vadd.f32 %v1850_v50, %v4486_v56  ;;  %3449 = vmatmul.msk.bf16.gmra.mxu1 %vm1127_vm1, %v3428_v54  ;;  %v3440_v50 = vor.u32 %v3752_v61, %v3439_v9  ;;  %v1801_v61 = vadd.f32 %v1800_v35, %v4681_v8  ;;  %v1806_v35 = vadd.f32 %v1805_v40, %v4695_v27 }
 0x441   : > { %3472 = vmatmul.msk.bf16.gmra.mxu3 %vm502_vm0, %v3857_v17 }
 0x444   : > { %v4807_v11 = vpop.f32.mrf.mxu3 }
 0x445   : > { %v4809_v52 = vpop.f32.mrf.mxu1  ;;  %v4832_v9 = vpop.f32.mrf.mxu0 }
 0x446   : > { %5346 = vst [vmem:[#allocation43_spill] sm:$0xff] %v4832_v9 }
 0x44c   : > { %v4816_v56 = vpop.f32.mrf.mxu3 }
 0x44d   : > { %v1854_v54 = vpop.f32.mrf.mxu1  ;;  %v1810_v32 = vpop.f32.mrf.mxu0 }
 0x44e   : > { %v1855_v48 = vadd.f32 %v1854_v54, %v1796_v57  ;;  %v1811_v42 = vadd.f32 %v1810_v32, %v4708_v2 }
 0x450   : > { %v4821_v17 = vadd.f32 %v1855_v48, %v4506_v37  ;;  %3450 = vmatmul.msk.bf16.gmra.mxu1 %vm1127_vm1, %v3440_v50 }
 0x451   : > { %3473 = vmatmul.msk.bf16.gmra.mxu3 %vm502_vm0, %v3858_v41  ;;  %v3859_v41 = vld [vmem:[%s5295_s1 + $0x58] sm:$0xff] }
 0x454   : > { %v4828_v59 = vpop.f32.mrf.mxu3 }
 0x455   : > { %v4830_v18 = vpop.f32.mrf.mxu1 }
 0x45c   : > { %v4835_v57 = vpop.f32.mrf.mxu3 }
 0x45d   : > { %v1859_v48 = vpop.f32.mrf.mxu1 }
 0x45e   : > { %v1860_v50 = vadd.f32 %v1859_v48, %v1801_v61 }
 0x460   : > { %v4840_v54 = vadd.f32 %v1860_v50, %v4524_v10  ;;  %v4855_v50 = vpop.f32.mrf.mxu0 }
 0x461   : > { %3474 = vmatmul.msk.bf16.gmra.mxu3 %vm502_vm0, %v3859_v41  ;;  %5347 = vst [vmem:[#allocation44_spill] sm:$0xff] %v4855_v50  ;;  %v3860_v41 = vld [vmem:[%s5295_s1 + $0x60] sm:$0xff] }
 0x464   : > { %v4846_v62 = vpop.f32.mrf.mxu3 }
 0x465   : > { %v4848_v8 = vpop.f32.mrf.mxu1 }
 0x468   : > { %v1815_v40 = vpop.f32.mrf.mxu0 }
 0x46c   : > { %v4851_v31 = vpop.f32.mrf.mxu3 }
 0x46d   : > { %v1864_v10 = vpop.f32.mrf.mxu1 }
 0x46e   : > { %v1865_v48 = vadd.f32 %v1864_v10, %v1806_v35 }
 0x470   : > { %v4858_v37 = vadd.f32 %v1865_v48, %v4541_v22  ;;  %v3861_v22 = vld [vmem:[%s5295_s1 + $0x68] sm:$0xff]  ;;  %v4874_v48 = vpop.f32.mrf.mxu0 }
 0x471   : > { %3475 = vmatmul.msk.bf16.gmra.mxu3 %vm502_vm0, %v3860_v41  ;;  %5351 = vst [vmem:[#allocation48_spill] sm:$0xff] %v4874_v48 }
 0x472   : > { %5348 = vst [vmem:[#allocation45_spill] sm:$0xff] %v4858_v37 }
 0x474   : > { %v1965_v55 = vpop.f32.mrf.mxu3 }
 0x475   : > { %v4864_v27 = vpop.f32.mrf.mxu1 }
 0x476   : > { %5349 = vst [vmem:[#allocation46_spill] sm:$0xff] %v4864_v27  ;;  %v1816_v27 = vadd.f32 %v1815_v40, %v4721_v16 }
 0x478   : > { %v1820_v32 = vpop.f32.mrf.mxu0 }
 0x479   : > { %v1821_v16 = vadd.f32 %v1820_v32, %v4734_v38 }
 0x47c   : > { %v1967_v61 = vpop.f32.mrf.mxu3 }
 0x47d   : > { %v1869_v9 = vpop.f32.mrf.mxu1 }
 0x47e   : > { %v1870_v35 = vadd.f32 %v1869_v9, %v1811_v42  ;;  %v3862_v9 = vld [vmem:[%s5295_s1 + $0x70] sm:$0xff] }
 0x480   : > { %v4868_v10 = vadd.f32 %v1870_v35, %v4550_v49  ;;  %v4888_v48 = vpop.f32.mrf.mxu0 }
 0x481   : > { %3476 = vmatmul.msk.bf16.gmra.mxu3 %vm502_vm0, %v3861_v22  ;;  %5354 = vst [vmem:[#allocation51_spill] sm:$0xff] %v4888_v48 }
 0x482   : > { %5350 = vst [vmem:[#allocation47_spill] sm:$0xff] %v4868_v10 }
 0x484   : > { %v1970_v41 = vpop.f32.mrf.mxu3 }
 0x485   : > { %v4876_v50 = vpop.f32.mrf.mxu1 }
 0x486   : > { %5352 = vst [vmem:[#allocation49_spill] sm:$0xff] %v4876_v50 }
 0x48c   : > { %v1972_v2 = vpop.f32.mrf.mxu3 }
 0x48d   : > { %v1874_v37 = vpop.f32.mrf.mxu1 }
 0x48e   : > { %v1875_v42 = vadd.f32 %v1874_v37, %v1816_v27  ;;  %v3863_v27 = vld [vmem:[%s5295_s1 + $0x78] sm:$0xff] }
 0x490   : > { %v4880_v49 = vadd.f32 %v1875_v42, %v4561_v13  ;;  %v1825_v13 = vpop.f32.mrf.mxu0 }
 0x491   : > { %3477 = vmatmul.msk.bf16.gmra.mxu3 %vm502_vm0, %v3862_v9  ;;  %v1826_v38 = vadd.f32 %v1825_v13, %v4747_v29 }
 0x494   : > { %v1975_v35 = vpop.f32.mrf.mxu3 }
 0x495   : > { %v4886_v22 = vpop.f32.mrf.mxu1 }
 0x496   : > { %5353 = vst [vmem:[#allocation50_spill] sm:$0xff] %v4886_v22 }
 0x498   : > { %v4900_v22 = vpop.f32.mrf.mxu0 }
 0x499   : > { %5356 = vst [vmem:[#allocation53_spill] sm:$0xff] %v4900_v22  ;;  %v2050_v22 = vpack.c.bf16 %v1972_v2, %v1970_v41 }
 0x49c   : > { %v1977_v40 = vpop.f32.mrf.mxu3 }
 0x49d   : > { %v1879_v50 = vpop.f32.mrf.mxu1 }
 0x49e   : > { %v1880_v10 = vadd.f32 %v1879_v50, %v1821_v16 }
 0x4a0   : > { %v4892_v37 = vadd.f32 %v1880_v10, %v4572_v0  ;;  %v2051_v10 = vpack.c.bf16 %v1977_v40, %v1975_v35  ;;  %v1830_v29 = vpop.f32.mrf.mxu0 }
 0x4a1   : > { %3478 = vmatmul.msk.bf16.gmra.mxu3 %vm502_vm0, %v3863_v27  ;;  %v3864_v27 = vld [vmem:[%s5295_s1 + $0x80] sm:$0xff] }
 0x4a4   : > { %v1980_v42 = vpop.f32.mrf.mxu3 }
 0x4a5   : > { %v4898_v9 = vpop.f32.mrf.mxu1 }
 0x4a6   : > { %5355 = vst [vmem:[#allocation52_spill] sm:$0xff] %v4898_v9 }
 0x4ac   : > { %v1982_v32 = vpop.f32.mrf.mxu3 }
 0x4ad   : > { %v2052_v48 = vpack.c.bf16 %v1982_v32, %v1980_v42  ;;  %v1884_v50 = vpop.f32.mrf.mxu1  ;;  %v2049_v42 = vpack.c.bf16 %v1967_v61, %v1965_v55  ;;  %v1832_v32 = vpop.f32.mrf.mxu0  ;;  %v3865_v55 = vld [vmem:[%s5295_s1 + $0x88] sm:$0xff] }
 0x4ae   : > { %v1885_v16 = vadd.f32 %v1884_v50, %v1826_v38  ;;  %v5357_v50 = vpack.c.bf16 %v4851_v31, %v4846_v62  ;;  %v1833_v61 = vadd.f32 %v1832_v32, %v4768_v34  ;;  %v5359_v31 = vpack.c.bf16 %v4816_v56, %v4807_v11 }
 0x4af   : > { %2286 = vmatpush.bf16.msrb.mxu0 %v2052_v48  ;;  %v5360_v62 = vpack.c.bf16 %v4794_v7, %v4790_v6  ;;  %v3867_v7 = vld [vmem:[%s5295_s1 + $0x98] sm:$0xff] }
 0x4b0   : > { %v4904_v0 = vadd.f32 %v1885_v16, %v4583_v39  ;;  %v1831_v39 = vadd.f32 %v1830_v29, %v4762_v53  ;;  %v5358_v53 = vpack.c.bf16 %v4835_v57, %v4828_v59  ;;  %v3866_v29 = vld [vmem:[%s5295_s1 + $0x90] sm:$0xff] }
 0x4b1   : > { %3479 = vmatmul.msk.bf16.gmra.mxu3 %vm502_vm0, %v3864_v27 }
 0x4b3   : > { %2287 = vmatpush.bf16.msrb.mxu0 %v2051_v10 }
 0x4b4   : > { %v4910_v9 = vpop.f32.mrf.mxu3 }
 0x4b5   : > { %v4912_v13 = vpop.f32.mrf.mxu1 }
 0x4b7   : > { %2288 = vmatpush.bf16.msrb.mxu0 %v2050_v22 }
 0x4bb   : > { %2289 = vmatpush.bf16.msrb.mxu0 %v2049_v42 }
 0x4bc   : > { %v1987_v48 = vpop.f32.mrf.mxu3 }
 0x4bd   : > { %v2053_v35 = vpack.c.bf16 %v1987_v48, %v4910_v9  ;;  %v1889_v40 = vpop.f32.mrf.mxu1 }
 0x4be   : > { %v1890_v38 = vadd.f32 %v1889_v40, %v1831_v39 }
 0x4bf   : > { %2290 = vmatpush.bf16.msrb.mxu0 %v5357_v50 }
 0x4c0   : > { %v4920_v41 = vadd.f32 %v1890_v38, %v4601_v30  ;;  %v1835_v30 = vpop.f32.mrf.mxu0 }
 0x4c1   : > { %3480 = vmatmul.msk.bf16.gmra.mxu3 %vm502_vm0, %v3865_v55  ;;  %v1836_v16 = vadd.f32 %v1835_v30, %v4777_v58 }
 0x4c3   : > { %2291 = vmatpush.bf16.msrb.mxu0 %v5358_v53 }
 0x4c4   : > { %v1990_v2 = vpop.f32.mrf.mxu3 }
 0x4c5   : > { %v1891_v22 = vpop.f32.mrf.mxu1 }
 0x4c6   : > { %v4930_v9 = vadd.f32 %v1891_v22, %v1833_v61 }
 0x4c7   : > { %2292 = vmatpush.bf16.msrb.mxu0 %v5359_v31 }
 0x4cb   : > { %2293 = vmatpush.bf16.msrb.mxu0 %v5360_v62 }
 0x4cc   : > { %v1992_v10 = vpop.f32.mrf.mxu3 }
 0x4cd   : > { %v2054_v59 = vpack.c.bf16 %v1992_v10, %v1990_v2  ;;  %v1894_v57 = vpop.f32.mrf.mxu1 }
 0x4ce   : > { %v1895_v27 = vadd.f32 %v1894_v57, %v1836_v16 }
 0x4d0   : > { %v4940_v34 = vadd.f32 %v1895_v27, %v4625_v3  ;;  %v3525_v27 = vld [vmem:[%s4076_s26 + $0x1e0] sm:$0xf] }
 0x4d1   : > { %3481 = vmatmul.msk.bf16.gmra.mxu3 %vm502_vm0, %v3866_v29  ;;  %v3756_v29 = vld [vmem:[%s4076_s26 + $0x1e8] sm:$0xf0] }
 0x4d4   : > { %v1995_v11 = vpop.f32.mrf.mxu3 }
 0x4dc   : > { %v1997_v56 = vpop.f32.mrf.mxu3 }
 0x4dd   : > { %v2055_v42 = vpack.c.bf16 %v1997_v56, %v1995_v11  ;;  %v3755_v11 = vld [vmem:[%s4076_s26 + $0x1e4] sm:$0xf]  ;;  %v3526_v56 = vor.u32 %v3756_v29, %v3525_v27  ;;  %v3549_v27 = vld [vmem:[%s4076_s26 + $0x210] sm:$0xf]  ;;  %v3762_v29 = vld [vmem:[%s4076_s26 + $0x218] sm:$0xf0] }
 0x4df   : > { %2294 = vmatmul.bf16.vlgmr.msrb.gmra.mxu0 %v3526_v56  ;;  %v3550_v56 = vor.u32 %v3762_v29, %v3549_v27  ;;  %v2550_v27 = vld [vmem:[%s4962_s13 + $0x30] sm:$0xff]  ;;  %v2548_v29 = vld [vmem:[%s4962_s13 + $0x20] sm:$0xff] }
 0x4e1   : > { %3482 = vmatmul.msk.bf16.gmra.mxu3 %vm502_vm0, %v3867_v7  ;;  %v3527_v7 = vld [vmem:[%s4076_s26 + $0x1ec] sm:$0xf0] }
 0x4e4   : > { %v2000_v58 = vpop.f32.mrf.mxu3 }
 0x4ec   : > { %v2002_v6 = vpop.f32.mrf.mxu3 }
 0x4ed   : > { %v2056_v39 = vpack.c.bf16 %v2002_v6, %v2000_v58  ;;  %v3530_v58 = vor.u32 %v3755_v11, %v3527_v7  ;;  %v3761_v11 = vld [vmem:[%s4076_s26 + $0x214] sm:$0xf]  ;;  %v3551_v7 = vld [vmem:[%s4076_s26 + $0x21c] sm:$0xf0] }
 0x4f4   : > { %v2005_v3 = vpop.f32.mrf.mxu3 }
 0x4fc   : > { %v2007_v48 = vpop.f32.mrf.mxu3 }
 0x4fd   : > { %v2057_v30 = vpack.c.bf16 %v2007_v48, %v2005_v3  ;;  %v3759_v3 = vld [vmem:[%s4076_s26 + $0x200] sm:$0xf0]  ;;  %v3758_v48 = vld [vmem:[%s4076_s26 + $0x1fc] sm:$0xf] }
 0x504   : > { %v2010_v40 = vpop.f32.mrf.mxu3 }
 0x50c   : > { %v2012_v38 = vpop.f32.mrf.mxu3 }
 0x50d   : > { %v2058_v31 = vpack.c.bf16 %v2012_v38, %v2010_v40  ;;  %v3539_v40 = vld [vmem:[%s4076_s26 + $0x204] sm:$0xf0] }
 0x514   : > { %v2015_v32 = vpop.f32.mrf.mxu3 }
 0x51c   : > { %v2017_v50 = vpop.f32.mrf.mxu3 }
 0x51d   : > { %v2059_v2 = vpack.c.bf16 %v2017_v50, %v2015_v32  ;;  %v2544_v50 = vld [vmem:[%s4962_s13] sm:$0xff] }
 0x524   : > { %v2020_v55 = vpop.f32.mrf.mxu3 }
 0x52c   : > { %v2022_v53 = vpop.f32.mrf.mxu3 }
 0x52d   : > { %v2060_v61 = vpack.c.bf16 %v2022_v53, %v2020_v55  ;;  %v3943_v55 = vmov 0  }
 0x52e   : > { %3844 = vset.pattern.permute.xlu0 %v3943_v55  ;;  %3845 = vset.pattern.permute.xlu1 %v3943_v55 }
 0x52f   : > { %2345 = vmatpush.bf16.msra.mxu1 %v2060_v61  ;;  %2566 = vperm.xlu0 %3844, %v2544_v50   ;;  %v3573_v50 = vld [vmem:[%s4076_s26 + $0x240] sm:$0xf] }
 0x530   : > { %3846 = vset.pattern.permute.xlu2 %v3943_v55  ;;  %v3768_v55 = vld [vmem:[%s4076_s26 + $0x248] sm:$0xf0] }
 0x531   : > { %2586 = vperm.xlu2 %3846, %v2548_v29   ;;  %v3776_v29 = vld [vmem:[%s4076_s26 + $0x28c] sm:$0xf] }
 0x533   : > { %2346 = vmatpush.bf16.msra.mxu1 %v2059_v2  ;;  %v2545_v2 = vld [vmem:[%s4962_s13 + $0x8] sm:$0xff] }
 0x534   : > { %v2025_v22 = vpop.f32.mrf.mxu3 }
 0x537   : > { %2347 = vmatpush.bf16.msra.mxu1 %v2058_v31  ;;  %v3533_v31 = vld [vmem:[%s4076_s26 + $0x1e8] sm:$0xf]  ;;  %2571 = vperm.xlu0 %3844, %v2545_v2   ;;  %v3575_v2 = vld [vmem:[%s4076_s26 + $0x24c] sm:$0xf0] }
 0x53b   : > { %2348 = vmatpush.bf16.msra.mxu1 %v2057_v30  ;;  %v3757_v30 = vld [vmem:[%s4076_s26 + $0x1f0] sm:$0xf0] }
 0x53c   : > { %v2027_v62 = vpop.f32.mrf.mxu3 }
 0x53f   : > { %2349 = vmatpush.bf16.msra.mxu1 %v2056_v39  ;;  %v3537_v39 = vld [vmem:[%s4076_s26 + $0x1f8] sm:$0xf]  ;;  %2596 = vperm.xlu0 %3844, %v2550_v27   ;;  %v3777_v27 = vld [vmem:[%s4076_s26 + $0x290] sm:$0xf0] }
 0x543   : > { %2350 = vmatpush.bf16.msra.mxu1 %v2055_v42 }
 0x544   : > { %v2030_v16 = vpop.f32.mrf.mxu3 }
 0x547   : > { %2351 = vmatpush.bf16.msra.mxu1 %v2054_v59  ;;  %v3538_v59 = vor.u32 %v3759_v3, %v3537_v39  ;;  %v3760_v39 = vld [vmem:[%s4076_s26 + $0x208] sm:$0xf0] }
 0x548   : > { %v3764_v3 = vld [vmem:[%s4076_s26 + $0x22c] sm:$0xf] }
 0x549   : > { %2299 = vmatmul.bf16.gmra.mxu0 %v3538_v59  ;;  %v3563_v59 = vld [vmem:[%s4076_s26 + $0x234] sm:$0xf0] }
 0x54b   : > { %2352 = vmatpush.bf16.msra.mxu1 %v2053_v35  ;;  %v3542_v35 = vor.u32 %v3758_v48, %v3539_v40  ;;  %v3566_v40 = vor.u32 %v3764_v3, %v3563_v59  ;;  %v3581_v3 = vld [vmem:[%s4076_s26 + $0x248] sm:$0xf]  ;;  %v3597_v59 = vld [vmem:[%s4076_s26 + $0x270] sm:$0xf] }
 0x54c   : > { %v2032_v10 = vpop.f32.mrf.mxu3 }
 0x54d   : > { %v2062_v61 = vpack.c.bf16 %v2032_v10, %v2030_v16  ;;  %v3534_v16 = vor.u32 %v3757_v30, %v3533_v31  ;;  %v2546_v10 = vld [vmem:[%s4962_s13 + $0x10] sm:$0xff] }
 0x54e   : > { %2353 = vmatmul.bf16.vlgmr.msra.gmra.mxu1 %v3530_v58  ;;  %v3554_v58 = vor.u32 %v3761_v11, %v3551_v7  ;;  %2576 = vperm.xlu1 %3845, %v2546_v10   ;;  %v2551_v11 = vld [vmem:[%s4962_s13 + $0x38] sm:$0xff] }
 0x54f   : > { %v3766_v7 = vld [vmem:[%s4076_s26 + $0x238] sm:$0xf0] }
 0x554   : > { %v2035_v57 = vpop.f32.mrf.mxu3 }
 0x559   : > { %2304 = vmatmul.bf16.gmra.mxu0 %v3550_v56  ;;  %v3569_v56 = vld [vmem:[%s4076_s26 + $0x230] sm:$0xf] }
 0x55c   : > { %v2037_v6 = vpop.f32.mrf.mxu3 }
 0x55d   : > { %v2063_v53 = vpack.c.bf16 %v2037_v6, %v2035_v57  ;;  %v2061_v57 = vpack.c.bf16 %v2027_v62, %v2025_v22  ;;  %v2547_v6 = vld [vmem:[%s4962_s13 + $0x18] sm:$0xff]  ;;  %v3765_v62 = vld [vmem:[%s4076_s26 + $0x230] sm:$0xf0] }
 0x55e   : > { %2358 = vmatmul.bf16.gmra.mxu1 %v3542_v35  ;;  %2581 = vperm.xlu1 %3845, %v2547_v6   ;;  %v3561_v22 = vld [vmem:[%s4076_s26 + $0x228] sm:$0xf] }
 0x55f   : > { %v3562_v48 = vor.u32 %v3765_v62, %v3561_v22  ;;  %v3587_v6 = vld [vmem:[%s4076_s26 + $0x264] sm:$0xf0] }
 0x560   : > { %v2549_v22 = vld [vmem:[%s4962_s13 + $0x28] sm:$0xff] }
 0x561   : > { %v2553_v62 = vld [vmem:[%s4962_s13 + $0x48] sm:$0xff]  ;;  %2591 = vperm.xlu2 %3846, %v2549_v22  }
 0x562   : > { %2611 = vperm.xlu0 %3844, %v2553_v62   ;;  %v3605_v22 = vld [vmem:[%s4076_s26 + $0x278] sm:$0xf]  ;;  %v3775_v62 = vld [vmem:[%s4076_s26 + $0x280] sm:$0xf0] }
 0x564   : > { %v2040_v42 = vpop.f32.mrf.mxu3 }
 0x566   : > { %2601 = vperm.xlu1 %3845, %v2551_v11  }
 0x569   : > { %2309 = vmatmul.bf16.gmra.mxu0 %v3562_v48  ;;  %v3769_v48 = vld [vmem:[%s4076_s26 + $0x250] sm:$0xf0] }
 0x56c   : > { %v2042_v38 = vpop.f32.mrf.mxu3 }
 0x56d   : > { %v2064_v32 = vpack.c.bf16 %v2042_v38, %v2040_v42  ;;  %v3545_v42 = vld [vmem:[%s4076_s26 + $0x200] sm:$0xf]  ;;  %v3557_v38 = vld [vmem:[%s4076_s26 + $0x218] sm:$0xf] }
 0x56e   : > { %2363 = vmatmul.bf16.gmra.mxu1 %v3554_v58  ;;  %v3546_v35 = vor.u32 %v3760_v39, %v3545_v42  ;;  %v3771_v58 = vld [vmem:[%s4076_s26 + $0x260] sm:$0xf0]  ;;  %v3570_v39 = vor.u32 %v3766_v7, %v3569_v56  ;;  %v3611_v56 = vld [vmem:[%s4076_s26 + $0x294] sm:$0xf0] }
 0x56f   : > { %2408 = vmatpush.bf16.msra.mxu2 %v2064_v32  ;;  %v3763_v32 = vld [vmem:[%s4076_s26 + $0x220] sm:$0xf0]  ;;  %v3614_v7 = vor.u32 %v3776_v29, %v3611_v56  ;;  %v3778_v29 = vld [vmem:[%s4076_s26 + $0x298] sm:$0xf0] }
 0x570   : > { %v3558_v30 = vor.u32 %v3763_v32, %v3557_v38  ;;  %v3599_v32 = vld [vmem:[%s4076_s26 + $0x27c] sm:$0xf0]  ;;  %v3783_v56 = vld [vmem:[%s4076_s26 + $0x2c0] sm:$0xf0] }
 0x573   : > { %2409 = vmatpush.bf16.msra.mxu2 %v2063_v53  ;;  %v3767_v53 = vld [vmem:[%s4076_s26 + $0x244] sm:$0xf] }
 0x574   : > { %v3578_v31 = vor.u32 %v3767_v53, %v3575_v2  ;;  %v2554_v53 = vld [vmem:[%s4962_s13 + $0x50] sm:$0xff] }
 0x575   : > { %2616 = vperm.xlu1 %3845, %v2554_v53   ;;  %v3593_v2 = vld [vmem:[%s4076_s26 + $0x260] sm:$0xf] }
 0x576   : > { %v2562_v53 = vld [vmem:[%s4962_s13 + $0x90] sm:$0xff] }
 0x577   : > { %2410 = vmatpush.bf16.msra.mxu2 %v2062_v61  ;;  %v3574_v61 = vor.u32 %v3768_v55, %v3573_v50  ;;  %v3582_v55 = vor.u32 %v3769_v48, %v3581_v3  ;;  %v3621_v48 = vld [vmem:[%s4076_s26 + $0x2a0] sm:$0xf] }
 0x579   : > { %2314 = vmatmul.bf16.gmra.mxu0 %v3574_v61  ;;  %v2552_v61 = vld [vmem:[%s4962_s13 + $0x40] sm:$0xff] }
 0x57a   : > { %2606 = vperm.xlu2 %3846, %v2552_v61   ;;  %v2563_v61 = vld [vmem:[%s4962_s13 + $0x98] sm:$0xff] }
 0x57b   : > { %2411 = vmatpush.bf16.msra.mxu2 %v2061_v57  ;;  %v3585_v57 = vld [vmem:[%s4076_s26 + $0x258] sm:$0xf] }
 0x57c   : > { %v3586_v10 = vor.u32 %v3771_v58, %v3585_v57  ;;  %v2556_v58 = vld [vmem:[%s4962_s13 + $0x60] sm:$0xff] }
 0x57d   : > { %2626 = vperm.xlu0 %3844, %v2556_v58   ;;  %v3635_v58 = vld [vmem:[%s4076_s26 + $0x2c4] sm:$0xf0] }
 0x57e   : > { %3643 = vmatmul.msk.bf16.vlgmr.msra.gmra.mxu2 %vm1127_vm1, %v3534_v16  ;;  %2368 = vmatmul.bf16.gmra.mxu1 %v3566_v40  ;;  %v3770_v16 = vld [vmem:[%s4076_s26 + $0x25c] sm:$0xf] }
 0x57f   : > { %v3590_v42 = vor.u32 %v3770_v16, %v3587_v6  ;;  %v3774_v40 = vld [vmem:[%s4076_s26 + $0x278] sm:$0xf0]  ;;  %v5021_v6 = vpop.f32.mrf.mxu1 }
 0x580   : > { %v3598_v38 = vor.u32 %v3774_v40, %v3597_v59  ;;  %v2557_v16 = vld [vmem:[%s4962_s13 + $0x68] sm:$0xff]  ;;  %v3779_v40 = vld [vmem:[%s4076_s26 + $0x2a4] sm:$0xf] }
 0x581   : > { %2631 = vperm.xlu1 %3845, %v2557_v16   ;;  %v3780_v59 = vld [vmem:[%s4076_s26 + $0x2a8] sm:$0xf0] }
 0x589   : > { %2319 = vmatmul.bf16.gmra.mxu0 %v3586_v10  ;;  %v5019_v10 = vpop.f32.mrf.mxu0 }
 0x58e   : > { %3644 = vmatmul.msk.bf16.gmra.mxu2 %vm1127_vm1, %v3546_v35  ;;  %2373 = vmatmul.bf16.gmra.mxu1 %v3578_v31  ;;  %v3773_v35 = vld [vmem:[%s4076_s26 + $0x274] sm:$0xf]  ;;  %v3772_v31 = vld [vmem:[%s4076_s26 + $0x268] sm:$0xf0] }
 0x58f   : > { %v3602_v50 = vor.u32 %v3773_v35, %v3599_v32  ;;  %v3594_v57 = vor.u32 %v3772_v31, %v3593_v2  ;;  %v3623_v32 = vld [vmem:[%s4076_s26 + $0x2ac] sm:$0xf0] }
 0x591   : > { %v2295_v3 = vpop.f32.mrf.mxu0 }
 0x599   : > { %2324 = vmatmul.bf16.gmra.mxu0 %v3598_v38  ;;  %v3622_v38 = vor.u32 %v3780_v59, %v3621_v48  ;;  %v2297_v2 = vpop.f32.mrf.mxu0 }
 0x59e   : > { %3645 = vmatmul.msk.bf16.gmra.mxu2 %vm1127_vm1, %v3558_v30  ;;  %2378 = vmatmul.bf16.gmra.mxu1 %v3590_v42  ;;  %v3609_v30 = vld [vmem:[%s4076_s26 + $0x288] sm:$0xf] }
 0x59f   : > { %v3610_v11 = vor.u32 %v3777_v27, %v3609_v30  ;;  %v2559_v42 = vld [vmem:[%s4962_s13 + $0x78] sm:$0xff]  ;;  %v3617_v27 = vld [vmem:[%s4076_s26 + $0x290] sm:$0xf] }
 0x5a0   : > { %2641 = vperm.xlu0 %3844, %v2559_v42   ;;  %v2555_v30 = vld [vmem:[%s4962_s13 + $0x58] sm:$0xff]  ;;  %v3618_v42 = vor.u32 %v3778_v29, %v3617_v27  ;;  %v1229_v27 = vadd.f32 %v4450_v23, %v4336_v36  ;;  %v3641_v23 = vld [vmem:[%s4076_s26 + $0x2c0] sm:$0xf] }
 0x5a1   : > { %2621 = vperm.xlu2 %3846, %v2555_v30  }
 0x5a8   : > { %2656 = vperm.xlu0 %3844, %v2562_v53  }
 0x5a9   : > { %2329 = vmatmul.bf16.gmra.mxu0 %v3610_v11  ;;  %v3633_v11 = vld [vmem:[%s4076_s26 + $0x2b8] sm:$0xf] }
 0x5ae   : > { %3646 = vmatmul.msk.bf16.gmra.mxu2 %vm1127_vm1, %v3570_v39  ;;  %2383 = vmatmul.bf16.gmra.mxu1 %v3602_v50  ;;  %v2560_v39 = vld [vmem:[%s4962_s13 + $0x80] sm:$0xff]  ;;  %v3626_v50 = vor.u32 %v3779_v40, %v3623_v32  ;;  %v3629_v40 = vld [vmem:[%s4076_s26 + $0x2a8] sm:$0xf] }
 0x5af   : > { %2646 = vperm.xlu1 %3845, %v2560_v39   ;;  %v2561_v32 = vld [vmem:[%s4962_s13 + $0x88] sm:$0xff] }
 0x5b7   : > { %2661 = vperm.xlu1 %3845, %v2563_v61  }
 0x5b9   : > { %2334 = vmatmul.bf16.gmra.mxu0 %v3622_v38  ;;  %v3781_v38 = vld [vmem:[%s4076_s26 + $0x2b0] sm:$0xf0] }
 0x5be   : > { %3647 = vmatmul.msk.bf16.gmra.mxu2 %vm1127_vm1, %v3582_v55  ;;  %2388 = vmatmul.bf16.gmra.mxu1 %v3614_v7  ;;  %v3606_v55 = vor.u32 %v3775_v62, %v3605_v22  ;;  %v3782_v7 = vld [vmem:[%s4076_s26 + $0x2bc] sm:$0xf]  ;;  %v2558_v62 = vld [vmem:[%s4962_s13 + $0x70] sm:$0xff]  ;;  %s3885_s13 = scalar_lea.hbm %s3884_s12, 2 }
 0x5bf   : > { %v3638_v16 = vor.u32 %v3782_v7, %v3635_v58  ;;  %2636 = vperm.xlu2 %3846, %v2558_v62   ;;  %v1793_v7 = vadd.f32 %v4770_v5, %v4669_v12  ;;  %p3886_p2 = scmp.ne.s32.totalorder %s3884_s12, %s3885_s13  ;;  %p3891_p6 = scmp.lt.s32.totalorder %s3889_s20, %s3885_s13 }
 0x5c1   : > { %v1852_v58 = vadd.f32 %v4809_v52, %v1793_v7  ;;  %p3887_p3 = pnand %p3886_p2, %p4037_p9  ;;  %p3892_p7 = por %p3891_p6, %p3890_p5 }
 0x5c3   : > { %p3888_p4 = pneg %p3887_p3 }
 0x5c5   : > { %p3893_p8 = pnand %p3892_p7, %p3888_p4 }
 0x5c6   : > { %v2300_v39 = vpop.f32.mrf.mxu0 }
 0x5c7   : > { %2651 = vperm.xlu2 %3846, %v2561_v32  }
 0x5cb   : > { %v2354_v35 = vpop.f32.mrf.mxu1 }
 0x5ce   : > { %3648 = vmatmul.msk.bf16.gmra.mxu2 %vm1127_vm1, %v3594_v57  ;;  %2393 = vmatmul.bf16.gmra.mxu1 %v3626_v50  ;;  %v3634_v57 = vor.u32 %v3783_v56, %v3633_v11  ;;  %v5043_v48 = vpop.f32.mrf.mxu0  ;;  %v3630_v50 = vor.u32 %v3781_v38, %v3629_v40  ;;  %v2567_v11 = vpop.permute.xlu0 %2566  ;;  %v5060_v56 = vld [vmem:[%s5299_s5] ss:$0 sm:$0xff] }
 0x5d0   : > { %2339 = vmatmul.bf16.gmra.mxu0 %v3634_v57 }
 0x5d3   : > { %v2356_v31 = vpop.f32.mrf.mxu1 }
 0x5d6   : > { %v5051_v53 = vpop.f32.mrf.mxu0 }
 0x5db   : > { %v2359_v22 = vpop.f32.mrf.mxu1 }
 0x5de   : > { %3649 = vmatmul.msk.bf16.gmra.mxu2 %vm1127_vm1, %v3606_v55  ;;  %2398 = vmatmul.bf16.gmra.mxu1 %v3638_v16  ;;  %v2355_v55 = vadd.f32 %v2354_v35, %v2295_v3  ;;  %v545_v3 = vadd.f32 %v5060_v56, %v4310_v63  ;;  %v1288_v35 = vadd.f32 %v4493_v44, %v1229_v27  ;;  %v3784_v63 = vld [vmem:[%s4076_s26 + $0x2c8] sm:$0xf0]  ;;  %v5078_v62 = vpop.f32.mrf.mxu0  ;;  %s2949_s26 = sshll.u32 %s4072_s29, 1 }
 0x5df   : > { %v3642_v40 = vor.u32 %v3784_v63, %v3641_v23  ;;  %v2577_v23 = vpop.permute.xlu1 %2576  ;;  %s391_s15 = scalar_lea.vmem [#allocation5], %s2949_s26 }
 0x5e0   : > { %v1336_v16 = vadd.f32 %v1288_v35, %v545_v3  ;;  %s2820_s19 = sshll.u32 %s391_s15, 4  ;;  %s2821_s19 = int_to_ptr.vmem [resolvable:$true] %s2820_s19 }
 0x5e3   : > { %v5045_v59 = vpop.f32.mrf.mxu1 }
 0x5eb   : > { %v5053_v61 = vpop.f32.mrf.mxu1 }
 0x5ee   : > { %3650 = vmatmul.msk.bf16.gmra.mxu2 %vm1127_vm1, %v3618_v42  ;;  %v2357_v42 = vadd.f32 %v2356_v31, %v2297_v2 }
 0x5f3   : > { %v5080_v5 = vpop.f32.mrf.mxu1 }
 0x5fe   : > { %3651 = vmatmul.msk.bf16.gmra.mxu2 %vm1127_vm1, %v3630_v50  ;;  %v2572_v50 = vpop.permute.xlu0 %2571 }
 0x601   : > { %v2413_v30 = vpop.f32.mrf.mxu2 }
 0x602   : > { %v2414_v29 = vadd.f32 %v2413_v30, %v2355_v55  ;;  %v2360_v30 = vadd.f32 %v2359_v22, %v2300_v39  ;;  %v550_v39 = vadd.f32 %v5060_v56, %v4330_v46 }
 0x604   : > { %v2463_v57 = vadd.f32 %v2414_v29, %v4800_v60  ;;  %v1900_v60 = vadd.f32 %v1852_v58, %v1336_v16  ;;  %v1234_v29 = vadd.f32 %v4468_v15, %v4346_v51  ;;  %v5091_v58 = vpop.f32.mrf.mxu0  ;;  %v5096_v51 = vpop.f32.mrf.mxu1  ;;  %v1798_v15 = vadd.f32 %v4788_v26, %v4675_v4 }
 0x606   : > { %v2483_v36 = vmax.f32 %v2463_v57, 0.0  ;;  %v1293_v22 = vadd.f32 %v4513_v24, %v1234_v29 }
 0x608   : > { %v2503_v44 = vpack.c.bf16 %v2483_v36, %v2483_v36  ;;  %v2664_v38 = vmul.f32 %v2567_v11, %v2483_v36 }
 0x609   : > { %v2415_v12 = vpop.f32.mrf.mxu2 }
 0x60a   : > { %2524 = vst.msk [vmem:[%s5074_s24] sm:$0xf] %vm2523_vm2, %v2503_v44  ;;  %v2416_v52 = vadd.f32 %v2415_v12, %v2357_v42  ;;  %v2729_v27 = vmul.f32 %v2664_v38, %v2664_v38  ;;  %v2684_v35 = vsel %vm502_vm0, %v2664_v38, 0.0  ;;  %v1857_v12 = vadd.f32 %v4830_v18, %v1798_v15 }
 0x60c   : > { %v2464_v32 = vadd.f32 %v2416_v52, %v1900_v60  ;;  %v2749_v63 = vsel %vm502_vm0, %v2729_v27, 0.0  ;;  %v1338_v60 = vadd.f32 %v1293_v22, %v550_v39  ;;  %v555_v22 = vadd.f32 %v5060_v56, %v4342_v45 }
 0x60e   : > { %3652 = vmatmul.msk.bf16.gmra.mxu2 %vm1127_vm1, %v3642_v40  ;;  %v2484_v55 = vmax.f32 %v2464_v32, 0.0  ;;  %v2362_v40 = vadd.f32 %v5045_v59, %v5043_v48  ;;  %v1902_v32 = vadd.f32 %v1857_v12, %v1338_v60  ;;  %v2365_v59 = vadd.f32 %v5053_v61, %v5051_v53 }
 0x60f   : > { %v1803_v61 = vadd.f32 %v4811_v28, %v4688_v19  ;;  %v2367_v60 = vadd.f32 %v5080_v5, %v5078_v62 }
 0x610   : > { %v2504_v2 = vpack.c.bf16 %v2484_v55, %v2484_v55  ;;  %v2665_v31 = vmul.f32 %v2572_v50, %v2484_v55 }
 0x611   : > { %v2418_v3 = vpop.f32.mrf.mxu2 }
 0x612   : > { %2525 = vst.msk [vmem:[%s5074_s24 + $0x4] sm:$0xf] %vm2523_vm2, %v2504_v2  ;;  %v2685_v7 = vsel %vm502_vm0, %v2665_v31, 0.0  ;;  %v2730_v11 = vmul.f32 %v2665_v31, %v2665_v31  ;;  %v2419_v57 = vadd.f32 %v2418_v3, %v2360_v30  ;;  %v5110_v30 = vpop.f32.mrf.mxu0  ;;  %v2582_v2 = vpop.permute.xlu1 %2581 }
 0x613   : > { %v2686_v36 = vadd.f32 %v2685_v7, %v2684_v35  ;;  %v5112_v31 = vpop.f32.mrf.mxu1  ;;  %v1239_v7 = vadd.f32 %v4495_v1, %v4362_v21 }
 0x614   : > { %v2750_v16 = vsel %vm502_vm0, %v2730_v11, 0.0  ;;  %v2465_v44 = vadd.f32 %v2419_v57, %v4821_v17 }
 0x615   : > { %v2751_v42 = vadd.f32 %v2750_v16, %v2749_v63  ;;  %v1298_v53 = vadd.f32 %v4530_v14, %v1239_v7  ;;  %v1862_v63 = vadd.f32 %v4848_v8, %v1803_v61  ;;  %v5362_v7 = vld [vmem:[#allocation45_spill] sm:$0xff] }
 0x616   : > { %v2485_v46 = vmax.f32 %v2465_v44, 0.0 }
 0x617   : > { %v1340_v12 = vadd.f32 %v1298_v53, %v555_v22 }
 0x618   : > { %v2505_v24 = vpack.c.bf16 %v2485_v46, %v2485_v46  ;;  %v2666_v52 = vmul.f32 %v2577_v23, %v2485_v46  ;;  %v2587_v23 = vpop.permute.xlu2 %2586 }
 0x619   : > { %v2420_v38 = vpop.f32.mrf.mxu2 }
 0x61a   : > { %2526 = vst.msk [vmem:[%s5074_s24 + $0x8] sm:$0xf] %vm2523_vm2, %v2505_v24  ;;  %v2687_v4 = vsel %vm502_vm0, %v2666_v52, 0.0  ;;  %v2731_v26 = vmul.f32 %v2666_v52, %v2666_v52  ;;  %v2421_v50 = vadd.f32 %v2420_v38, %v2362_v40  ;;  %v2315_v44 = vpop.f32.mrf.mxu0  ;;  %v1904_v24 = vadd.f32 %v1862_v63, %v1340_v12 }
 0x61b   : > { %v2688_v17 = vadd.f32 %v2687_v4, %v2686_v36 }
 0x61c   : > { %v2752_v55 = vsel %vm502_vm0, %v2731_v26, 0.0  ;;  %v2466_v18 = vadd.f32 %v2421_v50, %v1902_v32  ;;  %v2370_v26 = vadd.f32 %v5096_v51, %v5091_v58  ;;  %v5361_v51 = vld [vmem:[#allocation43_spill] sm:$0xff] }
 0x61d   : > { %v2753_v27 = vadd.f32 %v2752_v55, %v2751_v42  ;;  %v2374_v42 = vpop.f32.mrf.mxu1 }
 0x61e   : > { %v2486_v48 = vmax.f32 %v2466_v18, 0.0  ;;  %v1244_v18 = vadd.f32 %v4515_v43, %v4375_v25 }
 0x620   : > { %v2506_v29 = vpack.c.bf16 %v2486_v48, %v2486_v48  ;;  %v2667_v3 = vmul.f32 %v2582_v2, %v2486_v48  ;;  %v2592_v32 = vpop.permute.xlu2 %2591  ;;  %v1303_v58 = vadd.f32 %v4545_v47, %v1244_v18 }
 0x621   : > { %v2423_v35 = vpop.f32.mrf.mxu2 }
 0x622   : > { %2527 = vst.msk [vmem:[%s5074_s24 + $0xc] sm:$0xf] %vm2523_vm2, %v2506_v29  ;;  %v2689_v11 = vsel %vm502_vm0, %v2667_v3, 0.0  ;;  %v2732_v57 = vmul.f32 %v2667_v3, %v2667_v3  ;;  %v2424_v39 = vadd.f32 %v2423_v35, %v2365_v59  ;;  %v2317_v50 = vpop.f32.mrf.mxu0  ;;  %v560_v59 = vadd.f32 %v5060_v56, %v4360_v20 }
 0x623   : > { %v2690_v36 = vadd.f32 %v2689_v11, %v2688_v17  ;;  %v1808_v3 = vadd.f32 %v5361_v51, %v4701_v33  ;;  %v2597_v11 = vpop.permute.xlu0 %2596  ;;  %v2372_v20 = vadd.f32 %v5112_v31, %v5110_v30  ;;  %v5371_v51 = vld [vmem:[#allocation49_spill] sm:$0xff] }
 0x624   : > { %v2754_v15 = vsel %vm502_vm0, %v2732_v57, 0.0  ;;  %v2467_v21 = vadd.f32 %v2424_v39, %v4840_v54  ;;  %v5363_v57 = vld [vmem:[#allocation46_spill] sm:$0xff] }
 0x625   : > { %v2755_v1 = vadd.f32 %v2754_v15, %v2753_v27  ;;  %v2376_v55 = vpop.f32.mrf.mxu1  ;;  %v1867_v39 = vadd.f32 %v5363_v57, %v1808_v3 }
 0x626   : > { %v2487_v16 = vmax.f32 %v2467_v21, 0.0 }
 0x628   : > { %v2507_v45 = vpack.c.bf16 %v2487_v16, %v2487_v16  ;;  %v2668_v46 = vmul.f32 %v2587_v23, %v2487_v16 }
 0x629   : > { %v2425_v14 = vpop.f32.mrf.mxu2 }
 0x62a   : > { %2528 = vst.msk [vmem:[%s5074_s24 + $0x10] sm:$0xf] %vm2523_vm2, %v2507_v45  ;;  %v2691_v19 = vsel %vm502_vm0, %v2668_v46, 0.0  ;;  %v2733_v28 = vmul.f32 %v2668_v46, %v2668_v46  ;;  %v2426_v54 = vadd.f32 %v2425_v14, %v2367_v60  ;;  %v2602_v60 = vpop.permute.xlu1 %2601 }
 0x62b   : > { %v2692_v52 = vadd.f32 %v2691_v19, %v2690_v36  ;;  %v1342_v36 = vadd.f32 %v1303_v58, %v560_v59 }
 0x62c   : > { %v2756_v8 = vsel %vm502_vm0, %v2733_v28, 0.0  ;;  %v2468_v40 = vadd.f32 %v2426_v54, %v1904_v24  ;;  %v2375_v24 = vadd.f32 %v2374_v42, %v2315_v44  ;;  %v5364_v28 = vld [vmem:[#allocation15_spill] sm:$0xff]  ;;  %v5365_v54 = vld [vmem:[#allocation26_spill] sm:$0xff]  ;;  %v5369_v44 = vld [vmem:[#allocation44_spill] sm:$0xff] }
 0x62d   : > { %v2757_v38 = vadd.f32 %v2756_v8, %v2755_v1  ;;  %v1906_v47 = vadd.f32 %v1867_v39, %v1342_v36  ;;  %v2320_v1 = vpop.f32.mrf.mxu0  ;;  %v2379_v16 = vpop.f32.mrf.mxu1 }
 0x62e   : > { %v2488_v4 = vmax.f32 %v2468_v40, 0.0 }
 0x630   : > { %v2508_v62 = vpack.c.bf16 %v2488_v4, %v2488_v4  ;;  %v2669_v5 = vmul.f32 %v2592_v32, %v2488_v4  ;;  %v5366_v32 = vld [vmem:[#allocation14_spill] sm:$0xff] }
 0x631   : > { %v2428_v17 = vpop.f32.mrf.mxu2  ;;  %v565_v4 = vadd.f32 %v5060_v56, %v5366_v32 }
 0x632   : > { %2529 = vst.msk [vmem:[%s5074_s24 + $0x14] sm:$0xf] %vm2523_vm2, %v2508_v62  ;;  %v2693_v27 = vsel %vm502_vm0, %v2669_v5, 0.0  ;;  %v2734_v2 = vmul.f32 %v2669_v5, %v2669_v5  ;;  %v2429_v48 = vadd.f32 %v2428_v17, %v2370_v26  ;;  %v5367_v62 = vld [vmem:[#allocation28_spill] sm:$0xff]  ;;  %v5368_v17 = vld [vmem:[#allocation37_spill] sm:$0xff] }
 0x633   : > { %v2694_v29 = vadd.f32 %v2693_v27, %v2692_v52  ;;  %v1249_v52 = vadd.f32 %v5365_v54, %v5364_v28  ;;  %v1813_v42 = vadd.f32 %v5369_v44, %v5368_v17  ;;  %v5370_v27 = vld [vmem:[#allocation47_spill] sm:$0xff]  ;;  %v5376_v54 = vld [vmem:[#allocation38_spill] sm:$0xff] }
 0x634   : > { %v2758_v35 = vsel %vm502_vm0, %v2734_v2, 0.0  ;;  %v2469_v25 = vadd.f32 %v2429_v48, %v5362_v7 }
 0x635   : > { %v2759_v43 = vadd.f32 %v2758_v35, %v2757_v38  ;;  %v1308_v5 = vadd.f32 %v5367_v62, %v1249_v52  ;;  %v2322_v48 = vpop.f32.mrf.mxu0  ;;  %v2381_v58 = vpop.f32.mrf.mxu1  ;;  %v1872_v3 = vadd.f32 %v5371_v51, %v1813_v42  ;;  %v5377_v52 = vld [vmem:[#allocation48_spill] sm:$0xff] }
 0x636   : > { %v2489_v22 = vmax.f32 %v2469_v25, 0.0  ;;  %v2382_v42 = vadd.f32 %v2381_v58, %v2322_v48 }
 0x637   : > { %v1344_v7 = vadd.f32 %v1308_v5, %v565_v4 }
 0x638   : > { %v2509_v23 = vpack.c.bf16 %v2489_v22, %v2489_v22  ;;  %v2670_v53 = vmul.f32 %v2597_v11, %v2489_v22  ;;  %v2377_v11 = vadd.f32 %v2376_v55, %v2317_v50 }
 0x639   : > { %v2430_v61 = vpop.f32.mrf.mxu2  ;;  %v1908_v39 = vadd.f32 %v1872_v3, %v1344_v7 }
 0x63a   : > { %2530 = vst.msk [vmem:[%s5074_s24 + $0x18] sm:$0xf] %vm2523_vm2, %v2509_v23  ;;  %v2695_v33 = vsel %vm502_vm0, %v2670_v53, 0.0  ;;  %v2735_v15 = vmul.f32 %v2670_v53, %v2670_v53  ;;  %v2431_v21 = vadd.f32 %v2430_v61, %v2372_v20 }
 0x63b   : > { %v2696_v63 = vadd.f32 %v2695_v33, %v2694_v29  ;;  %v2607_v29 = vpop.permute.xlu2 %2606  ;;  %v2612_v33 = vpop.permute.xlu0 %2611 }
 0x63c   : > { %v2760_v12 = vsel %vm502_vm0, %v2735_v15, 0.0  ;;  %v2470_v45 = vadd.f32 %v2431_v21, %v1906_v47  ;;  %v2380_v21 = vadd.f32 %v2379_v16, %v2320_v1 }
 0x63d   : > { %v2761_v46 = vadd.f32 %v2760_v12, %v2759_v43  ;;  %v2384_v12 = vpop.f32.mrf.mxu1 }
 0x63e   : > { %v2490_v14 = vmax.f32 %v2470_v45, 0.0  ;;  %v5372_v45 = vld [vmem:[#allocation17_spill] sm:$0xff] }
 0x640   : > { %v2510_v30 = vpack.c.bf16 %v2490_v14, %v2490_v14  ;;  %v2671_v31 = vmul.f32 %v2602_v60, %v2490_v14 }
 0x641   : > { %v2433_v19 = vpop.f32.mrf.mxu2 }
 0x642   : > { %2531 = vst.msk [vmem:[%s5074_s24 + $0x1c] sm:$0xf] %vm2523_vm2, %v2510_v30  ;;  %v2697_v8 = vsel %vm502_vm0, %v2671_v31, 0.0  ;;  %v2736_v40 = vmul.f32 %v2671_v31, %v2671_v31  ;;  %v2434_v38 = vadd.f32 %v2433_v19, %v2375_v24  ;;  %v5374_v30 = vld [vmem:[#allocation16_spill] sm:$0xff]  ;;  %v5375_v19 = vld [vmem:[#allocation29_spill] sm:$0xff] }
 0x643   : > { %v2698_v26 = vadd.f32 %v2697_v8, %v2696_v63  ;;  %v2325_v63 = vpop.f32.mrf.mxu0  ;;  %v570_v31 = vadd.f32 %v5060_v56, %v5374_v30  ;;  %v1818_v8 = vadd.f32 %v5377_v52, %v5376_v54 }
 0x644   : > { %v2762_v18 = vsel %vm502_vm0, %v2736_v40, 0.0  ;;  %v2471_v2 = vadd.f32 %v2434_v38, %v5370_v27  ;;  %v2617_v40 = vpop.permute.xlu1 %2616  ;;  %v5378_v38 = vld [vmem:[#allocation50_spill] sm:$0xff]  ;;  %v2385_v58 = vadd.f32 %v2384_v12, %v2325_v63 }
 0x645   : > { %v2763_v59 = vadd.f32 %v2762_v18, %v2761_v46  ;;  %v5373_v46 = vld [vmem:[#allocation27_spill] sm:$0xff]  ;;  %v1877_v32 = vadd.f32 %v5378_v38, %v1818_v8 }
 0x646   : > { %v2491_v35 = vmax.f32 %v2471_v2, 0.0  ;;  %v1254_v60 = vadd.f32 %v5373_v46, %v5372_v45  ;;  %v5383_v45 = vld [vmem:[#allocation39_spill] sm:$0xff] }
 0x647   : > { %v5384_v46 = vld [vmem:[#allocation51_spill] sm:$0xff] }
 0x648   : > { %v2511_v25 = vpack.c.bf16 %v2491_v35, %v2491_v35  ;;  %v2672_v43 = vmul.f32 %v2607_v29, %v2491_v35  ;;  %v1313_v28 = vadd.f32 %v5375_v19, %v1254_v60  ;;  %v1823_v63 = vadd.f32 %v5384_v46, %v5383_v45 }
 0x649   : > { %v2435_v57 = vpop.f32.mrf.mxu2 }
 0x64a   : > { %2532 = vst.msk [vmem:[%s5074_s24 + $0x20] sm:$0xf] %vm2523_vm2, %v2511_v25  ;;  %v2699_v22 = vsel %vm502_vm0, %v2672_v43, 0.0  ;;  %v2737_v36 = vmul.f32 %v2672_v43, %v2672_v43  ;;  %v2436_v23 = vadd.f32 %v2435_v57, %v2377_v11  ;;  %v1346_v62 = vadd.f32 %v1313_v28, %v570_v31  ;;  %v2622_v57 = vpop.permute.xlu2 %2621  ;;  %v2627_v28 = vpop.permute.xlu0 %2626 }
 0x64b   : > { %v2700_v53 = vadd.f32 %v2699_v22, %v2698_v26  ;;  %v2327_v18 = vpop.f32.mrf.mxu0 }
 0x64c   : > { %v2764_v20 = vsel %vm502_vm0, %v2737_v36, 0.0  ;;  %v2472_v61 = vadd.f32 %v2436_v23, %v1908_v39  ;;  %v1910_v29 = vadd.f32 %v1877_v32, %v1346_v62  ;;  %v5379_v36 = vld [vmem:[#allocation19_spill] sm:$0xff]  ;;  %v5380_v23 = vld [vmem:[#allocation30_spill] sm:$0xff] }
 0x64d   : > { %v2765_v47 = vadd.f32 %v2764_v20, %v2763_v59  ;;  %v2386_v59 = vpop.f32.mrf.mxu1 }
 0x64e   : > { %v2492_v15 = vmax.f32 %v2472_v61, 0.0 }
 0x650   : > { %v2512_v50 = vpack.c.bf16 %v2492_v15, %v2492_v15  ;;  %v2673_v55 = vmul.f32 %v2612_v33, %v2492_v15  ;;  %v5381_v15 = vld [vmem:[#allocation18_spill] sm:$0xff] }
 0x651   : > { %v2438_v14 = vpop.f32.mrf.mxu2 }
 0x652   : > { %2533 = vst.msk [vmem:[%s5074_s24 + $0x24] sm:$0xf] %vm2523_vm2, %v2512_v50  ;;  %v2439_v24 = vadd.f32 %v2438_v14, %v2380_v21  ;;  %v2738_v1 = vmul.f32 %v2673_v55, %v2673_v55  ;;  %v2701_v4 = vsel %vm502_vm0, %v2673_v55, 0.0  ;;  %v5382_v21 = vld [vmem:[#allocation31_spill] sm:$0xff]  ;;  %v5385_v14 = vld [vmem:[#allocation52_spill] sm:$0xff] }
 0x653   : > { %v2702_v27 = vadd.f32 %v2701_v4, %v2700_v53  ;;  %v1259_v53 = vadd.f32 %v5380_v23, %v5379_v36  ;;  %v2330_v33 = vpop.f32.mrf.mxu0 }
 0x654   : > { %v2473_v16 = vadd.f32 %v2439_v24, %v4880_v49  ;;  %v2766_v5 = vsel %vm502_vm0, %v2738_v1, 0.0  ;;  %v1882_v24 = vadd.f32 %v5385_v14, %v1823_v63  ;;  %v2387_v1 = vadd.f32 %v2386_v59, %v2327_v18  ;;  %v2632_v59 = vpop.permute.xlu1 %2631 }
 0x655   : > { %v2767_v35 = vadd.f32 %v2766_v5, %v2765_v47  ;;  %v575_v47 = vadd.f32 %v5060_v56, %v5381_v15  ;;  %v1318_v50 = vadd.f32 %v5382_v21, %v1259_v53  ;;  %v2389_v55 = vpop.f32.mrf.mxu1 }
 0x656   : > { %v2493_v26 = vmax.f32 %v2473_v16, 0.0  ;;  %v2390_v18 = vadd.f32 %v2389_v55, %v2330_v33 }
 0x657   : > { %v1348_v19 = vadd.f32 %v1318_v50, %v575_v47  ;;  %v2637_v47 = vpop.permute.xlu2 %2636 }
 0x658   : > { %v2513_v17 = vpack.c.bf16 %v2493_v26, %v2493_v26  ;;  %v2674_v44 = vmul.f32 %v2617_v40, %v2493_v26 }
 0x659   : > { %v2440_v2 = vpop.f32.mrf.mxu2  ;;  %v1912_v38 = vadd.f32 %v1882_v24, %v1348_v19 }
 0x65a   : > { %2534 = vst.msk [vmem:[%s5074_s24 + $0x28] sm:$0xf] %vm2523_vm2, %v2513_v17  ;;  %v2703_v49 = vsel %vm502_vm0, %v2674_v44, 0.0  ;;  %v2739_v51 = vmul.f32 %v2674_v44, %v2674_v44  ;;  %v2441_v3 = vadd.f32 %v2440_v2, %v2382_v42 }
 0x65b   : > { %v2704_v7 = vadd.f32 %v2703_v49, %v2702_v27  ;;  %v2332_v44 = vpop.f32.mrf.mxu0 }
 0x65c   : > { %v2768_v25 = vsel %vm502_vm0, %v2739_v51, 0.0  ;;  %v2474_v43 = vadd.f32 %v2441_v3, %v1910_v29  ;;  %v5386_v51 = vld [vmem:[#allocation21_spill] sm:$0xff]  ;;  %v5387_v3 = vld [vmem:[#allocation32_spill] sm:$0xff] }
 0x65d   : > { %v2769_v11 = vadd.f32 %v2768_v25, %v2767_v35  ;;  %v2391_v27 = vpop.f32.mrf.mxu1  ;;  %v1264_v35 = vadd.f32 %v5387_v3, %v5386_v51 }
 0x65e   : > { %v2494_v48 = vmax.f32 %v2474_v43, 0.0  ;;  %v5388_v43 = vld [vmem:[#allocation20_spill] sm:$0xff]  ;;  %v2392_v46 = vadd.f32 %v2391_v27, %v2332_v44  ;;  %v5395_v44 = vld [vmem:[#allocation35_spill] sm:$0xff] }
 0x660   : > { %v2514_v39 = vpack.c.bf16 %v2494_v48, %v2494_v48  ;;  %v2675_v22 = vmul.f32 %v2622_v57, %v2494_v48  ;;  %v5389_v57 = vld [vmem:[#allocation33_spill] sm:$0xff] }
 0x661   : > { %v2443_v20 = vpop.f32.mrf.mxu2  ;;  %v1323_v48 = vadd.f32 %v5389_v57, %v1264_v35 }
 0x662   : > { %2535 = vst.msk [vmem:[%s5074_s24 + $0x2c] sm:$0xf] %vm2523_vm2, %v2514_v39  ;;  %v2444_v61 = vadd.f32 %v2443_v20, %v2385_v58  ;;  %v2740_v12 = vmul.f32 %v2675_v22, %v2675_v22  ;;  %v2705_v30 = vsel %vm502_vm0, %v2675_v22, 0.0  ;;  %v5390_v58 = vld [vmem:[#allocation40_spill] sm:$0xff]  ;;  %v5391_v39 = vld [vmem:[#allocation53_spill] sm:$0xff] }
 0x663   : > { %v2706_v16 = vadd.f32 %v2705_v30, %v2704_v7  ;;  %v1828_v22 = vadd.f32 %v5391_v39, %v5390_v58  ;;  %v2335_v33 = vpop.f32.mrf.mxu0 }
 0x664   : > { %v2475_v60 = vadd.f32 %v2444_v61, %v4892_v37  ;;  %v2770_v54 = vsel %vm502_vm0, %v2740_v12, 0.0 }
 0x665   : > { %v2771_v26 = vadd.f32 %v2770_v54, %v2769_v11  ;;  %v580_v11 = vadd.f32 %v5060_v56, %v5388_v43  ;;  %v1887_v53 = vadd.f32 %v4912_v13, %v1828_v22  ;;  %v2394_v21 = vpop.f32.mrf.mxu1 }
 0x666   : > { %v2495_v31 = vmax.f32 %v2475_v60, 0.0 }
 0x667   : > { %v1350_v15 = vadd.f32 %v1323_v48, %v580_v11 }
 0x668   : > { %v2515_v52 = vpack.c.bf16 %v2495_v31, %v2495_v31  ;;  %v2676_v8 = vmul.f32 %v2627_v28, %v2495_v31 }
 0x669   : > { %v2445_v40 = vpop.f32.mrf.mxu2  ;;  %v1914_v60 = vadd.f32 %v1887_v53, %v1350_v15  ;;  %v2652_v15 = vpop.permute.xlu2 %2651 }
 0x66a   : > { %2536 = vst.msk [vmem:[%s5074_s24 + $0x30] sm:$0xf] %vm2523_vm2, %v2515_v52  ;;  %v2707_v32 = vsel %vm502_vm0, %v2676_v8, 0.0  ;;  %v2741_v37 = vmul.f32 %v2676_v8, %v2676_v8  ;;  %v2446_v4 = vadd.f32 %v2445_v40, %v2387_v1  ;;  %v2395_v52 = vadd.f32 %v2394_v21, %v2335_v33  ;;  %v2642_v8 = vpop.permute.xlu0 %2641 }
 0x66b   : > { %v2708_v62 = vadd.f32 %v2707_v32, %v2706_v16  ;;  %v2337_v40 = vpop.f32.mrf.mxu0  ;;  %v5393_v32 = vld [vmem:[#allocation34_spill] sm:$0xff] }
 0x66c   : > { %v2772_v5 = vsel %vm502_vm0, %v2741_v37, 0.0  ;;  %v2476_v17 = vadd.f32 %v2446_v4, %v1912_v38  ;;  %v5392_v38 = vld [vmem:[#allocation22_spill] sm:$0xff] }
 0x66d   : > { %v2773_v42 = vadd.f32 %v2772_v5, %v2771_v26  ;;  %v1269_v37 = vadd.f32 %v5393_v32, %v5392_v38  ;;  %v2396_v26 = vpop.f32.mrf.mxu1  ;;  %v5394_v5 = vld [vmem:[#allocation23_spill] sm:$0xff] }
 0x66e   : > { %v2496_v2 = vmax.f32 %v2476_v17, 0.0  ;;  %v585_v17 = vadd.f32 %v5060_v56, %v5394_v5 }
 0x670   : > { %v2516_v29 = vpack.c.bf16 %v2496_v2, %v2496_v2  ;;  %v2677_v49 = vmul.f32 %v2632_v59, %v2496_v2 }
 0x671   : > { %v2448_v7 = vpop.f32.mrf.mxu2 }
 0x672   : > { %2537 = vst.msk [vmem:[%s5074_s24 + $0x34] sm:$0xf] %vm2523_vm2, %v2516_v29  ;;  %v2449_v25 = vadd.f32 %v2448_v7, %v2390_v18  ;;  %v2742_v36 = vmul.f32 %v2677_v49, %v2677_v49  ;;  %v2709_v20 = vsel %vm502_vm0, %v2677_v49, 0.0  ;;  %v2647_v49 = vpop.permute.xlu1 %2646  ;;  %v2397_v7 = vadd.f32 %v2396_v26, %v2337_v40  ;;  %v2657_v40 = vpop.permute.xlu0 %2656 }
 0x673   : > { %v2710_v63 = vadd.f32 %v2709_v20, %v2708_v62  ;;  %v2340_v22 = vpop.f32.mrf.mxu0 }
 0x674   : > { %v2477_v23 = vadd.f32 %v2449_v25, %v4904_v0  ;;  %v2774_v50 = vsel %vm502_vm0, %v2742_v36, 0.0 }
 0x675   : > { %v2775_v24 = vadd.f32 %v2774_v50, %v2773_v42  ;;  %v1328_v42 = vadd.f32 %v5395_v44, %v1269_v37  ;;  %v2399_v36 = vpop.f32.mrf.mxu1  ;;  %v5396_v50 = vld [vmem:[#allocation24_spill] sm:$0xff] }
 0x676   : > { %v2497_v61 = vmax.f32 %v2477_v23, 0.0  ;;  %v2400_v33 = vadd.f32 %v2399_v36, %v2340_v22 }
 0x677   : > { %v1352_v29 = vadd.f32 %v1328_v42, %v585_v17 }
 0x678   : > { %v2517_v55 = vpack.c.bf16 %v2497_v61, %v2497_v61  ;;  %v2678_v45 = vmul.f32 %v2637_v47, %v2497_v61 }
 0x679   : > { %v2450_v12 = vpop.f32.mrf.mxu2  ;;  %v1916_v11 = vadd.f32 %v4930_v9, %v1352_v29 }
 0x67a   : > { %2538 = vst.msk [vmem:[%s5074_s24 + $0x38] sm:$0xf] %vm2523_vm2, %v2517_v55  ;;  %v2711_v0 = vsel %vm502_vm0, %v2678_v45, 0.0  ;;  %v2743_v13 = vmul.f32 %v2678_v45, %v2678_v45  ;;  %v2451_v14 = vadd.f32 %v2450_v12, %v2392_v46  ;;  %v5397_v55 = vld [vmem:[#allocation36_spill] sm:$0xff] }
 0x67b   : > { %v2712_v30 = vadd.f32 %v2711_v0, %v2710_v63  ;;  %v1274_v45 = vadd.f32 %v5397_v55, %v5396_v50 }
 0x67c   : > { %v2776_v31 = vsel %vm502_vm0, %v2743_v13, 0.0  ;;  %v2478_v19 = vadd.f32 %v2451_v14, %v1914_v60  ;;  %v5398_v60 = vld [vmem:[#allocation25_spill] sm:$0xff] }
 0x67d   : > { %v2777_v28 = vadd.f32 %v2776_v31, %v2775_v24  ;;  %v590_v0 = vadd.f32 %v5060_v56, %v5398_v60  ;;  %v5399_v14 = vld [vmem:[#allocation41_spill] sm:$0xff] }
 0x67e   : > { %v2498_v54 = vmax.f32 %v2478_v19, 0.0  ;;  %v1333_v24 = vadd.f32 %v5399_v14, %v1274_v45 }
 0x680   : > { %v2518_v1 = vpack.c.bf16 %v2498_v54, %v2498_v54  ;;  %v2679_v16 = vmul.f32 %v2642_v8, %v2498_v54  ;;  %v2401_v8 = vpop.f32.mrf.mxu1  ;;  %v1354_v38 = vadd.f32 %v1333_v24, %v590_v0 }
 0x681   : > { %v2453_v4 = vpop.f32.mrf.mxu2 }
 0x682   : > { %2539 = vst.msk [vmem:[%s5074_s24 + $0x3c] sm:$0xf] %vm2523_vm2, %v2518_v1  ;;  %v2454_v62 = vadd.f32 %v2453_v4, %v2395_v52  ;;  %v2744_v27 = vmul.f32 %v2679_v16, %v2679_v16  ;;  %v2713_v18 = vsel %vm502_vm0, %v2679_v16, 0.0  ;;  %v2342_v52 = vpop.f32.mrf.mxu0 }
 0x683   : > { %v2714_v25 = vadd.f32 %v2713_v18, %v2712_v30  ;;  %v5400_v30 = vld [vmem:[#allocation42_spill] sm:$0xff]  ;;  %v2402_v37 = vadd.f32 %v2401_v8, %v2342_v52 }
 0x684   : > { %v2479_v2 = vadd.f32 %v2454_v62, %v4920_v41  ;;  %v2778_v51 = vsel %vm502_vm0, %v2744_v27, 0.0  ;;  %v1838_v31 = vadd.f32 %v5019_v10, %v5400_v30  ;;  %v2662_v27 = vpop.permute.xlu1 %2661 }
 0x685   : > { %v2779_v58 = vadd.f32 %v2778_v51, %v2777_v28 }
 0x686   : > { %v2499_v59 = vmax.f32 %v2479_v2, 0.0  ;;  %v1897_v1 = vadd.f32 %v5021_v6, %v1838_v31 }
 0x688   : > { %v2519_v3 = vpack.c.bf16 %v2499_v59, %v2499_v59  ;;  %v2680_v35 = vmul.f32 %v2647_v49, %v2499_v59  ;;  %v1918_v26 = vadd.f32 %v1897_v1, %v1354_v38 }
 0x689   : > { %v2455_v43 = vpop.f32.mrf.mxu2 }
 0x68a   : > { %2540 = vst.msk [vmem:[%s5074_s24 + $0x40] sm:$0xf] %vm2523_vm2, %v2519_v3  ;;  %v2715_v57 = vsel %vm502_vm0, %v2680_v35, 0.0  ;;  %v2745_v48 = vmul.f32 %v2680_v35, %v2680_v35  ;;  %v2456_v41 = vadd.f32 %v2455_v43, %v2397_v7 }
 0x68b   : > { %v2716_v39 = vadd.f32 %v2715_v57, %v2714_v25 }
 0x68c   : > { %v2780_v23 = vsel %vm502_vm0, %v2745_v48, 0.0  ;;  %v2480_v53 = vadd.f32 %v2456_v41, %v1916_v11 }
 0x68d   : > { %v2781_v20 = vadd.f32 %v2780_v23, %v2779_v58 }
 0x68e   : > { %v2500_v61 = vmax.f32 %v2480_v53, 0.0 }
 0x690   : > { %v2520_v47 = vpack.c.bf16 %v2500_v61, %v2500_v61  ;;  %v2681_v9 = vmul.f32 %v2652_v15, %v2500_v61 }
 0x691   : > { %v2458_v21 = vpop.f32.mrf.mxu2 }
 0x692   : > { %2541 = vst.msk [vmem:[%s5074_s24 + $0x44] sm:$0xf] %vm2523_vm2, %v2520_v47  ;;  %v2717_v46 = vsel %vm502_vm0, %v2681_v9, 0.0  ;;  %v2746_v63 = vmul.f32 %v2681_v9, %v2681_v9  ;;  %v2459_v12 = vadd.f32 %v2458_v21, %v2400_v33 }
 0x693   : > { %v2718_v13 = vadd.f32 %v2717_v46, %v2716_v39 }
 0x694   : > { %v2782_v19 = vsel %vm502_vm0, %v2746_v63, 0.0  ;;  %v2481_v28 = vadd.f32 %v2459_v12, %v4940_v34 }
 0x695   : > { %v2783_v54 = vadd.f32 %v2782_v19, %v2781_v20 }
 0x696   : > { %v2501_v16 = vmax.f32 %v2481_v28, 0.0 }
 0x698   : > { %v2521_v56 = vpack.c.bf16 %v2501_v16, %v2501_v16  ;;  %v2682_v32 = vmul.f32 %v2657_v40, %v2501_v16 }
 0x699   : > { %v2460_v4 = vpop.f32.mrf.mxu2 }
 0x69a   : > { %2542 = vst.msk [vmem:[%s5074_s24 + $0x48] sm:$0xf] %vm2523_vm2, %v2521_v56  ;;  %v2719_v10 = vsel %vm502_vm0, %v2682_v32, 0.0  ;;  %v2747_v62 = vmul.f32 %v2682_v32, %v2682_v32  ;;  %v2461_v34 = vadd.f32 %v2460_v4, %v2402_v37 }
 0x69b   : > { %v2720_v5 = vadd.f32 %v2719_v10, %v2718_v13 }
 0x69c   : > { %v2784_v17 = vsel %vm502_vm0, %v2747_v62, 0.0  ;;  %v2482_v44 = vadd.f32 %v2461_v34, %v1918_v26 }
 0x69d   : > { %v2785_v6 = vadd.f32 %v2784_v17, %v2783_v54 }
 0x69e   : > { %v2502_v42 = vmax.f32 %v2482_v44, 0.0 }
 0x6a0   : > { %v2522_v2 = vpack.c.bf16 %v2502_v42, %v2502_v42  ;;  %v2683_v18 = vmul.f32 %v2662_v27, %v2502_v42 }
 0x6a2   : > { %2543 = vst.msk [vmem:[%s5074_s24 + $0x4c] sm:$0xf] %vm2523_vm2, %v2522_v2  ;;  %v2721_v59 = vsel %vm502_vm0, %v2683_v18, 0.0  ;;  %v2748_v29 = vmul.f32 %v2683_v18, %v2683_v18 }
 0x6a3   : > { %v2722_v49 = vadd.f32 %v2721_v59, %v2720_v5 }
 0x6a4   : > { %v2786_v51 = vsel %vm502_vm0, %v2748_v29, 0.0 }
 0x6a5   : > { %v2723_v3 = vrot.slane %v2722_v49, 4  ;;  %v2787_v35 = vadd.f32 %v2786_v51, %v2785_v6 }
 0x6a7   : > { %v2724_v7 = vadd.f32 %v2723_v3, %v2722_v49  ;;  %v2788_v25 = vrot.slane %v2787_v35, 4 }
 0x6a9   : > { %v2725_v43 = vrot.slane %v2724_v7, 2  ;;  %v2789_v11 = vadd.f32 %v2788_v25, %v2787_v35 }
 0x6ab   : > { %v2726_v57 = vadd.f32 %v2725_v43, %v2724_v7  ;;  %v2790_v48 = vrot.slane %v2789_v11, 2 }
 0x6ad   : > { %v2727_v41 = vrot.slane %v2726_v57, 1  ;;  %v2791_v58 = vadd.f32 %v2790_v48, %v2789_v11 }
 0x6af   : > { %v2792_v39 = vrot.slane %v2791_v58, 1  ;;  %v2728_v22 = vadd.f32 %v2727_v41, %v2726_v57 }
 0x6b1   : > { %v2793_v36 = vadd.f32 %v2792_v39, %v2791_v58 }
 0x6b3   : > { %v2795_v23 = vsel %vm2794_vm3, %v2728_v22, %v2793_v36 }
 0x6b4   : > { %2797 = vst.msk [vmem:[%s391_s15] sm:$0x3] %vm2796_vm4, %v2795_v23 }
 0x6b5   : > { %3896 = shalt.err (!%p3893_p8)
}
 0x6b6   : > { %3797 = dma.vmem_to_hbm [thread:$0]  (%p4037_p9), %s2821_s19, 32, %s2823_s10, %s2804_s9  }
 0x6b7 PF: > { %s2842_s29 = sand.u32 1, %s3923_s27   ;;  %p3800_p12 = pnand %p2944_p11, %p4041_p10 }
 0x6b8   : > { %s2843_s26 = scalar_lea.sflag [#allocation4], %s2842_s29 }
 0x6b9   : > { %p3801_p13 = pneg %p3800_p12 }
 0x6bb   : > { %3918 = dma.done.wait (%p3801_p13), %s2843_s26, 32  }
 0x6bc   : > { %3920 = vsyncadd (%p3801_p13), %s2843_s26, 4294967264  ;;  %s5401_s30 = sld [smem:[#allocation12_spill]]  ;;  %s5404_s27 = smov %s3927_s28 }
 0x6bd   : > { %s5402_s21 = sld [smem:[#allocation11_spill]] }
 0x6be   : > { %s5403_s29 = sld [smem:[#allocation13_spill]] }
 0x6c2   : > { %p22_p0 = scmp.ge.s32.totalorder %s5401_s30, 4  }
 0x6c3   : > { %s5405_s28 = smov %s5402_s21 }
 0x6c4   :  { %24 = sbr.rel (!%p22_p0) target bundleno = 5 (0x5), region = 120 }
 0x6c9   :  { %2849 = vsyncpa [#allocation3], 1 }
 0x6ca   :  { %2851 = vsyncpa [#allocation3 + $0x1], 1 }
 0x6cb   :  { %2852 = vsyncpa [#allocation4], 1 }
 0x6cc   :  { %2854 = vsyncpa [#allocation4 + $0x1], 1 }

</bundles_post_ra>
